<compile_context>
chip_gen: v6e
topology: v6e:2x2x1
jax: 0.10.0
libtpu: 0.0.40
codegen_flags: <defaults>
</compile_context>

<pallas_src>
import math
import functools

import numpy as np
import jax
import jax.numpy as jnp
from jax.experimental import pallas as pl
from jax.experimental.pallas import tpu as pltpu

_VMEM = pltpu.MemorySpace.VMEM


# ----------------------------------------------------------------------------
# small helpers
# ----------------------------------------------------------------------------
def _dot(a, b):
    return jnp.dot(a, b, preferred_element_type=jnp.float32)


def _dot_nt(a, b):
    # a @ b.T expressed through dimension_numbers (no explicit transpose).
    return jax.lax.dot_general(a, b, (((1,), (1,)), ((), ())),
                               preferred_element_type=jnp.float32)


# ----------------------------------------------------------------------------
# Pallas kernels
# ----------------------------------------------------------------------------
def _matmul_bias_kernel(x_ref, w_ref, b_ref, o_ref):
    o_ref[...] = _dot(x_ref[...], w_ref[...]) + b_ref[...]


def pallas_patch_embed(patches, w, pos):
    M = patches.shape[0]
    N = w.shape[1]
    return pl.pallas_call(
        _matmul_bias_kernel,
        out_shape=jax.ShapeDtypeStruct((M, N), jnp.float32),
        in_specs=[pl.BlockSpec(memory_space=_VMEM)] * 3,
        out_specs=pl.BlockSpec(memory_space=_VMEM),
    )(patches, w, pos)


def pallas_head(x2, w, b):
    M = x2.shape[0]
    N = w.shape[1]
    return pl.pallas_call(
        _matmul_bias_kernel,
        out_shape=jax.ShapeDtypeStruct((M, N), jnp.float32),
        in_specs=[pl.BlockSpec(memory_space=_VMEM)] * 3,
        out_specs=pl.BlockSpec(memory_space=_VMEM),
    )(x2, w, b)


def _encoder_layer_kernel(x_ref, aw_ref, ab_ref, sw_ref, sb_ref, aproj_ref,
                          sproj_ref, pbias_ref, c1_ref, c2_ref, pmat_ref,
                          rmat_ref, ssum_ref, dmat_ref, maskb_ref, o_ref,
                          *, n_heads, head_dim, seg_len, top_k):
    """One full HybridEncoderLayer on a (rows, d_model) chunk, VMEM-resident."""
    x = x_ref[...]                                            # (R, D)
    d_model = x.shape[-1]

    # ---------------- AutoCorrelation branch ----------------
    qa = _dot(x, aw_ref[0]) + ab_ref[0]
    ka = _dot(x, aw_ref[1]) + ab_ref[1]
    va = _dot(x, aw_ref[2]) + ab_ref[2]

    # per-row dot products <q_(g,t), k_(g,s)> ; pmat selects s = (t - tau) % L
    g = _dot_nt(qa, ka)                                       # (R, R)
    ssum = ssum_ref[...]
    mv = []
    for tau in range(seg_len):
        row = jnp.sum(g * pmat_ref[tau], axis=-1, keepdims=True)      # (R, 1)
        mv.append(_dot(ssum, row) * (1.0 / d_model))                  # per-group mean corr

    # inference-mode top-k delay selection + softmax (threshold formulation;
    # exact for distinct correlation values, which is the generic case)
    cur = list(mv)
    thresh = cur[0]
    for _ in range(top_k):
        thresh = cur[0]
        for v in cur[1:]:
            thresh = jnp.maximum(thresh, v)
        cur = [jnp.where(v >= thresh, -1e30, v) for v in cur]
    w = [jnp.where(v >= thresh, v, -1e30) for v in mv]
    wmax = w[0]
    for v in w[1:]:
        wmax = jnp.maximum(wmax, v)
    e = [jnp.exp(v - wmax) for v in w]
    denom = e[0]
    for v in e[1:]:
        denom = denom + v
    coef = [v / denom for v in e]                             # (R, 1) each

    # weighted circular shifts of V: agg[(g,t),(g,s)] = sum_tau c_tau [s=(t+tau)%L]
    agg = coef[0] * rmat_ref[0]
    for tau in range(1, seg_len):
        agg = agg + coef[tau] * rmat_ref[tau]
    auto_inner = _dot(agg, va)                                # (R, D)

    # auto out-projection pre-folded into attention_fusion (aproj = ao_w @ fw1)
    fused = _dot(auto_inner, aproj_ref[...])

    # ---------------- Self-attention branch (per head) ----------------
    scale = 1.0 / math.sqrt(head_dim)
    maskb = maskb_ref[...]                                    # block-diag batch mask
    for h in range(n_heads):
        qh = _dot(x, sw_ref[0 * n_heads + h]) + sb_ref[0 * n_heads + h]
        kh = _dot(x, sw_ref[1 * n_heads + h]) + sb_ref[1 * n_heads + h]
        vh = _dot(x, sw_ref[2 * n_heads + h]) + sb_ref[2 * n_heads + h]
        s = _dot_nt(qh, kh) * scale + maskb                   # (R, R)
        s = s - jnp.max(s, axis=-1, keepdims=True)
        p = jnp.exp(s)
        p = p / jnp.sum(p, axis=-1, keepdims=True)
        oh = _dot(p, vh)                                      # (R, E)
        fused = fused + _dot(oh, sproj_ref[h])                # sproj = so_w @ fw2 per head

    fused = fused + pbias_ref[...]                            # combined biases

    # residual + decomp1 (moving-average residual as constant (I - A) matmul)
    x1 = _dot(dmat_ref[...], x + fused)
    # FFN: Conv1d(k=1) -> ReLU -> Conv1d(k=1)
    hmid = jnp.maximum(_dot(x1, c1_ref[...]), 0.0)
    y = _dot(hmid, c2_ref[...])
    # residual + decomp2
    o_ref[...] = _dot(dmat_ref[...], x1 + y)


def encoder_layer_fused(x2, lp, consts, cfg):
    """Run one HybridEncoderLayer as a single pallas_call over x2 (rows, D)."""
    M, D = x2.shape
    L = cfg["patch_num"]
    H = cfg["n_heads"]
    rows = consts["dmat"].shape[0]
    n_chunks = M // rows
    top_k = max(1, int(cfg["factor"] * math.log(L)))

    kern = functools.partial(_encoder_layer_kernel, n_heads=H,
                             head_dim=D // H, seg_len=L, top_k=top_k)
    others = [lp["a_w"], lp["a_b"], lp["s_w"], lp["s_b"], lp["a_proj"],
              lp["s_proj"], lp["p_bias"], lp["c1_w"], lp["c2_w"],
              consts["pmat"], consts["rmat"], consts["ssum"],
              consts["dmat"], consts["maskb"]]

    in_specs = [pl.BlockSpec((rows, D), lambda i: (i, 0))]
    for a in others:
        in_specs.append(pl.BlockSpec(a.shape, lambda i, nd=a.ndim: (0,) * nd))

    return pl.pallas_call(
        kern,
        out_shape=jax.ShapeDtypeStruct((M, D), jnp.float32),
        grid=(n_chunks,),
        in_specs=in_specs,
        out_specs=pl.BlockSpec((rows, D), lambda i: (i, 0)),
        compiler_params=pltpu.CompilerParams(
            dimension_semantics=("parallel",)),
    )(x2, *others)


# ----------------------------------------------------------------------------
# constant matrices (per-chunk, built once on host)
# ----------------------------------------------------------------------------
def build_constants(chunk_groups, L, kernel_size):
    R = chunk_groups * L
    P = np.zeros((L, R, R), np.float32)
    Rm = np.zeros((L, R, R), np.float32)
    for tau in range(L):
        for gidx in range(chunk_groups):
            for t in range(L):
                P[tau, gidx * L + t, gidx * L + (t - tau) % L] = 1.0
                Rm[tau, gidx * L + t, gidx * L + (t + tau) % L] = 1.0
    ssum = np.kron(np.eye(chunk_groups, dtype=np.float32),
                   np.ones((L, L), np.float32))
    # moving average with edge replication (series_decomp)
    pad = (kernel_size - 1) // 2
    A = np.zeros((L, L), np.float32)
    for t in range(L):
        for j in range(t - pad, t + pad + 1):
            A[t, min(max(j, 0), L - 1)] += 1.0 / kernel_size
    dmat = np.kron(np.eye(chunk_groups, dtype=np.float32),
                   np.eye(L, dtype=np.float32) - A)
    blk = np.kron(np.eye(chunk_groups, dtype=np.float32),
                  np.ones((L, L), np.float32))
    maskb = np.where(blk > 0, 0.0, -1e30).astype(np.float32)
    return dict(pmat=jnp.asarray(P), rmat=jnp.asarray(Rm),
                ssum=jnp.asarray(ssum), dmat=jnp.asarray(dmat),
                maskb=jnp.asarray(maskb))


def positional_embedding(max_len, d_model):
    position = jnp.arange(max_len, dtype=jnp.float32)[:, None]
    div_term = jnp.exp(jnp.arange(0, d_model, 2, dtype=jnp.float32)
                       * -(math.log(10000.0) / d_model))
    pe = jnp.zeros((max_len, d_model), jnp.float32)
    pe = pe.at[:, 0::2].set(jnp.sin(position * div_term))
    pe = pe.at[:, 1::2].set(jnp.cos(position * div_term))
    return pe


# ----------------------------------------------------------------------------
# parameter preparation (done once, outside jit)
# ----------------------------------------------------------------------------
def prepare_params(params, cfg, batch_size):
    D = cfg["d_model"]
    H = cfg["n_heads"]
    E = D // H
    P = cfg["patch_num"]
    pred = cfg["pred_len"]
    C = cfg["enc_in"]

    prep = {"patch_w": params["patch_w"],
            "pos_tiled": jnp.tile(params["pos_emb"][:P], (batch_size * C, 1))}

    # fold eval BatchNorm into the head and permute rows so no transpose of the
    # activation is needed (enc is consumed as (groups, P*D) row-major).
    s = params["bn_gamma"] / jnp.sqrt(params["bn_rv"] + 1e-5)
    t = params["bn_beta"] - params["bn_rm"] * s
    W3 = params["head_w"].reshape(D, P, pred)                 # [channel, patch, out]
    prep["head_w"] = (W3 * s[:, None, None]).transpose(1, 0, 2).reshape(P * D, pred)
    prep["head_b"] = (params["head_b"]
                      + jnp.sum(W3 * t[:, None, None], axis=(0, 1))).reshape(1, pred)

    layers = []
    for lp in params["layers"]:
        d = {}
        d["a_w"] = jnp.stack([lp["aq_w"], lp["ak_w"], lp["av_w"]])         # (3,D,D)
        d["a_b"] = jnp.stack([lp["aq_b"], lp["ak_b"], lp["av_b"]])[:, None, :]
        sw, sb = [], []
        for wname, bname in (("sq_w", "sq_b"), ("sk_w", "sk_b"), ("sv_w", "sv_b")):
            sw.append(lp[wname].reshape(D, H, E).transpose(1, 0, 2))        # (H,D,E)
            sb.append(lp[bname].reshape(H, 1, E))
        d["s_w"] = jnp.concatenate(sw, axis=0)                              # (3H,D,E)
        d["s_b"] = jnp.concatenate(sb, axis=0)                              # (3H,1,E)
        fw1, fw2 = lp["fuse_w"][:D], lp["fuse_w"][D:]
        d["a_proj"] = lp["ao_w"] @ fw1                                      # (D,D)
        d["s_proj"] = (lp["so_w"] @ fw2).reshape(H, E, D)                   # (H,E,D)
        d["p_bias"] = (lp["ao_b"] @ fw1 + lp["so_b"] @ fw2
                       + lp["fuse_b"]).reshape(1, D)
        d["c1_w"] = lp["conv1_w"]
        d["c2_w"] = lp["conv2_w"]
        layers.append(d)
    prep["layers"] = layers

    groups = batch_size * C
    n_chunks = 2 if groups % 2 == 0 else 1
    prep["consts"] = build_constants(groups // n_chunks, P, cfg["moving_avg"])
    return prep


# ----------------------------------------------------------------------------
# forward pass
# ----------------------------------------------------------------------------
def model_forward(prep, cfg, x_enc):
    """HybridPatchAutoformer.forecast (task_name='long_term_forecast')."""
    B, Lseq, C = x_enc.shape
    P = cfg["patch_num"]
    D = cfg["d_model"]

    # instance normalization
    means = jnp.mean(x_enc, axis=1, keepdims=True)
    xc = x_enc - means
    stdev = jnp.sqrt(jnp.var(xc, axis=1, keepdims=True) + 1e-5)
    xn = xc / stdev

    # patch construction (ReplicationPad1d + unfold)
    xp = jnp.transpose(xn, (0, 2, 1))                          # (B, C, L)
    stride, plen = cfg["stride"], cfg["patch_len"]
    xpad = jnp.concatenate(
        [xp, jnp.repeat(xp[..., -1:], stride, axis=-1)], axis=-1)
    patches = jnp.stack(
        [xpad[..., i * stride:i * stride + plen] for i in range(P)], axis=2)
    patches = patches.reshape(B * C * P, plen)

    # value embedding + positional embedding (fused)
    enc = pallas_patch_embed(patches, prep["patch_w"], prep["pos_tiled"])

    # hybrid encoder: one fused pallas_call per layer
    for lp in prep["layers"]:
        enc = encoder_layer_fused(enc, lp, prep["consts"], cfg)

    # head (BatchNorm folded into head_w/head_b, rows pre-permuted)
    enc_flat = enc.reshape(B * C, P * D)
    dec = pallas_head(enc_flat, prep["head_w"], prep["head_b"])   # (B*C, pred)
    dec_out = jnp.transpose(dec.reshape(B, C, -1), (0, 2, 1))     # (B, pred, C)

    # de-normalization
    dec_out = dec_out * stdev[:, 0, :][:, None, :] + means[:, 0, :][:, None, :]
    return dec_out[:, -cfg["pred_len"]:, :]


# ----------------------------------------------------------------------------
# deterministic parameter init (PyTorch-like uniform fan-in init)
# ----------------------------------------------------------------------------
def _dense(key, fan_in, fan_out, bias=True):
    k1, k2 = jax.random.split(key)
    bound = 1.0 / math.sqrt(fan_in)
    w = jax.random.uniform(k1, (fan_in, fan_out), jnp.float32, -bound, bound)
    b = jax.random.uniform(k2, (fan_out,), jnp.float32, -bound, bound) if bias else None
    return w, b


def init_params(key, cfg):
    d_model, d_ff = cfg["d_model"], cfg["d_ff"]
    patch_len, patch_num, pred_len = cfg["patch_len"], cfg["patch_num"], cfg["pred_len"]

    keys = jax.random.split(key, 4 + cfg["e_layers"])
    params = {}
    params["patch_w"], _ = _dense(keys[0], patch_len, d_model, bias=False)
    params["pos_emb"] = positional_embedding(patch_num, d_model)
    params["head_w"], params["head_b"] = _dense(keys[1], d_model * patch_num, pred_len)
    params["bn_gamma"] = jnp.ones((d_model,), jnp.float32)
    params["bn_beta"] = jnp.zeros((d_model,), jnp.float32)
    params["bn_rm"] = jnp.zeros((d_model,), jnp.float32)
    params["bn_rv"] = jnp.ones((d_model,), jnp.float32)

    layers = []
    for l in range(cfg["e_layers"]):
        lk = jax.random.split(keys[4 + l], 11)
        lp = {}
        lp["aq_w"], lp["aq_b"] = _dense(lk[0], d_model, d_model)
        lp["ak_w"], lp["ak_b"] = _dense(lk[1], d_model, d_model)
        lp["av_w"], lp["av_b"] = _dense(lk[2], d_model, d_model)
        lp["ao_w"], lp["ao_b"] = _dense(lk[3], d_model, d_model)
        lp["sq_w"], lp["sq_b"] = _dense(lk[4], d_model, d_model)
        lp["sk_w"], lp["sk_b"] = _dense(lk[5], d_model, d_model)
        lp["sv_w"], lp["sv_b"] = _dense(lk[6], d_model, d_model)
        lp["so_w"], lp["so_b"] = _dense(lk[7], d_model, d_model)
        lp["fuse_w"], lp["fuse_b"] = _dense(lk[8], 2 * d_model, d_model)
        lp["conv1_w"], _ = _dense(lk[9], d_model, d_ff, bias=False)
        lp["conv2_w"], _ = _dense(lk[10], d_ff, d_model, bias=False)
        layers.append(lp)
    params["layers"] = layers
    return params


# ----------------------------------------------------------------------------
# Main
# ----------------------------------------------------------------------------
if __name__ == "__main__":
    cfg = dict(
        task_name="long_term_forecast",
        seq_len=32,
        pred_len=8,
        enc_in=4,
        d_model=32,
        n_heads=4,
        d_ff=64,
        e_layers=2,
        moving_avg=5,
        patch_len=16,
        stride=8,
        factor=1,
    )
    cfg["patch_num"] = int((cfg["seq_len"] - cfg["patch_len"]) / cfg["stride"] + 2)

    key = jax.random.PRNGKey(0)
    k_param, k_x = jax.random.split(key)
    params = init_params(k_param, cfg)

    batch = 2
    x_enc = jax.random.normal(k_x, (batch, cfg["seq_len"], cfg["enc_in"]), jnp.float32)
    # x_mark_enc / x_dec / x_mark_dec are not used by the forecast output path.

    prep = prepare_params(params, cfg, batch)
    fwd = jax.jit(lambda p, x: model_forward(p, cfg, x))
    out = fwd(prep, x_enc)
    out = jax.block_until_ready(out)

    assert out.shape == (batch, cfg["pred_len"], cfg["enc_in"]), out.shape
    assert bool(jnp.all(jnp.isfinite(out)))
    print("KERNEL_OK")
</pallas_src>

<mosaic_0001>
module attributes {stable_mosaic.version = 11 : i64} {
  func.func @_matmul_bias_kernel(%arg0: memref<32x16xf32, #tpu.memory_space<vmem>>, %arg1: memref<16x32xf32, #tpu.memory_space<vmem>>, %arg2: memref<32x32xf32, #tpu.memory_space<vmem>>, %arg3: memref<32x32xf32, #tpu.memory_space<vmem>>) attributes {dimension_semantics = [], scalar_prefetch = 0 : i64, scratch_operands = 0 : i64, tpu.core_type = #tpu.core_type<tc>} {
    %c0 = arith.constant 0 : index
    %c0_0 = arith.constant 0 : index
    %0 = vector.load %arg0[%c0, %c0_0] : memref<32x16xf32, #tpu.memory_space<vmem>>, vector<32x16xf32>
    %c0_1 = arith.constant 0 : index
    %c0_2 = arith.constant 0 : index
    %1 = vector.load %arg1[%c0_1, %c0_2] : memref<16x32xf32, #tpu.memory_space<vmem>>, vector<16x32xf32>
    %cst = arith.constant dense<0.000000e+00> : vector<32x32xf32>
    %2 = tpu.matmul %0, %1, %cst {dimension_numbers = #tpu.dot_dimension_numbers<[1], [0], [0], [1], [0, 0, 1, 1], [], []>} : vector<32x16xf32>, vector<16x32xf32>, vector<32x32xf32> -> vector<32x32xf32>
    %c0_3 = arith.constant 0 : index
    %c0_4 = arith.constant 0 : index
    %3 = vector.load %arg2[%c0_3, %c0_4] : memref<32x32xf32, #tpu.memory_space<vmem>>, vector<32x32xf32>
    %4 = arith.addf %2, %3 : vector<32x32xf32>
    %c0_5 = arith.constant 0 : index
    %c0_6 = arith.constant 0 : index
    %5 = vector.load %arg3[%c0_5, %c0_6] : memref<32x32xf32, #tpu.memory_space<vmem>>, vector<32x32xf32>
    tpu.vector_store %arg3[%c0_5, %c0_6], %4 {strides = array<i32>} : memref<32x32xf32, #tpu.memory_space<vmem>>, vector<32x32xf32>,
    return
  }
}

module attributes {stable_mosaic.version = 11 : i64} {
  func.func @_matmul_bias_kernel(%arg0: memref<8x128xf32, #tpu.memory_space<vmem>>, %arg1: memref<128x8xf32, #tpu.memory_space<vmem>>, %arg2: memref<1x8xf32, #tpu.memory_space<vmem>>, %arg3: memref<8x8xf32, #tpu.memory_space<vmem>>) attributes {dimension_semantics = [], scalar_prefetch = 0 : i64, scratch_operands = 0 : i64, tpu.core_type = #tpu.core_type<tc>} {
    %c0 = arith.constant 0 : index
    %c0_0 = arith.constant 0 : index
    %0 = vector.load %arg0[%c0, %c0_0] : memref<8x128xf32, #tpu.memory_space<vmem>>, vector<8x128xf32>
    %c0_1 = arith.constant 0 : index
    %c0_2 = arith.constant 0 : index
    %1 = vector.load %arg1[%c0_1, %c0_2] : memref<128x8xf32, #tpu.memory_space<vmem>>, vector<128x8xf32>
    %cst = arith.constant dense<0.000000e+00> : vector<8x8xf32>
    %2 = tpu.matmul %0, %1, %cst {dimension_numbers = #tpu.dot_dimension_numbers<[1], [0], [0], [1], [0, 0, 1, 1], [], []>} : vector<8x128xf32>, vector<128x8xf32>, vector<8x8xf32> -> vector<8x8xf32>
    %c0_3 = arith.constant 0 : index
    %c0_4 = arith.constant 0 : index
    %3 = vector.load %arg2[%c0_3, %c0_4] : memref<1x8xf32, #tpu.memory_space<vmem>>, vector<1x8xf32>
    %4 = vector.broadcast %3 : vector<1x8xf32> to vector<8x8xf32>
    %5 = arith.addf %2, %4 : vector<8x8xf32>
    %c0_5 = arith.constant 0 : index
    %c0_6 = arith.constant 0 : index
    %6 = vector.load %arg3[%c0_5, %c0_6] : memref<8x8xf32, #tpu.memory_space<vmem>>, vector<8x8xf32>
    tpu.vector_store %arg3[%c0_5, %c0_6], %5 {strides = array<i32>} : memref<8x8xf32, #tpu.memory_space<vmem>>, vector<8x8xf32>,
    return
  }
}

module attributes {stable_mosaic.version = 11 : i64} {
  func.func @_encoder_layer_kernel(%arg0: i32, %arg1: memref<16x32xf32, #tpu.memory_space<vmem>>, %arg2: memref<3x32x32xf32, #tpu.memory_space<vmem>>, %arg3: memref<3x1x32xf32, #tpu.memory_space<vmem>>, %arg4: memref<12x32x8xf32, #tpu.memory_space<vmem>>, %arg5: memref<12x1x8xf32, #tpu.memory_space<vmem>>, %arg6: memref<32x32xf32, #tpu.memory_space<vmem>>, %arg7: memref<4x8x32xf32, #tpu.memory_space<vmem>>, %arg8: memref<1x32xf32, #tpu.memory_space<vmem>>, %arg9: memref<32x64xf32, #tpu.memory_space<vmem>>, %arg10: memref<64x32xf32, #tpu.memory_space<vmem>>, %arg11: memref<4x16x16xf32, #tpu.memory_space<vmem>>, %arg12: memref<4x16x16xf32, #tpu.memory_space<vmem>>, %arg13: memref<16x16xf32, #tpu.memory_space<vmem>>, %arg14: memref<16x16xf32, #tpu.memory_space<vmem>>, %arg15: memref<16x16xf32, #tpu.memory_space<vmem>>, %arg16: memref<16x32xf32, #tpu.memory_space<vmem>>) attributes {dimension_semantics = [#tpu.dimension_semantics<parallel>], iteration_bounds = array<i64: 2>, scalar_prefetch = 0 : i64, scratch_operands = 0 : i64, tpu.core_type = #tpu.core_type<tc>, window_params = [{transform_indices = @transform_0, window_bounds = array<i64: 16, 32>}, {pipeline_mode = #tpu.pipeline_mode<synchronous>, transform_indices = @transform_1, window_bounds = array<i64: 3, 32, 32>}, {pipeline_mode = #tpu.pipeline_mode<synchronous>, transform_indices = @transform_2, window_bounds = array<i64: 3, 1, 32>}, {pipeline_mode = #tpu.pipeline_mode<synchronous>, transform_indices = @transform_3, window_bounds = array<i64: 12, 32, 8>}, {pipeline_mode = #tpu.pipeline_mode<synchronous>, transform_indices = @transform_4, window_bounds = array<i64: 12, 1, 8>}, {pipeline_mode = #tpu.pipeline_mode<synchronous>, transform_indices = @transform_5, window_bounds = array<i64: 32, 32>}, {pipeline_mode = #tpu.pipeline_mode<synchronous>, transform_indices = @transform_6, window_bounds = array<i64: 4, 8, 32>}, {pipeline_mode = #tpu.pipeline_mode<synchronous>, transform_indices = @transform_7, window_bounds = array<i64: 1, 32>}, {pipeline_mode = #tpu.pipeline_mode<synchronous>, transform_indices = @transform_8, window_bounds = array<i64: 32, 64>}, {pipeline_mode = #tpu.pipeline_mode<synchronous>, transform_indices = @transform_9, window_bounds = array<i64: 64, 32>}, {pipeline_mode = #tpu.pipeline_mode<synchronous>, transform_indices = @transform_10, window_bounds = array<i64: 4, 16, 16>}, {pipeline_mode = #tpu.pipeline_mode<synchronous>, transform_indices = @transform_11, window_bounds = array<i64: 4, 16, 16>}, {pipeline_mode = #tpu.pipeline_mode<synchronous>, transform_indices = @transform_12, window_bounds = array<i64: 16, 16>}, {pipeline_mode = #tpu.pipeline_mode<synchronous>, transform_indices = @transform_13, window_bounds = array<i64: 16, 16>}, {pipeline_mode = #tpu.pipeline_mode<synchronous>, transform_indices = @transform_14, window_bounds = array<i64: 16, 16>}, {transform_indices = @transform_15, window_bounds = array<i64: 16, 32>}]} {
    %c0 = arith.constant 0 : index
    %c0_0 = arith.constant 0 : index
    %0 = vector.load %arg1[%c0, %c0_0] : memref<16x32xf32, #tpu.memory_space<vmem>>, vector<16x32xf32>
    %c0_1 = arith.constant 0 : index
    %c0_2 = arith.constant 0 : index
    %c0_3 = arith.constant 0 : index
    %1 = vector.load %arg2[%c0_1, %c0_2, %c0_3] : memref<3x32x32xf32, #tpu.memory_space<vmem>>, vector<1x32x32xf32>
    %2 = vector.shape_cast %1 : vector<1x32x32xf32> to vector<32x32xf32>
    %cst = arith.constant dense<0.000000e+00> : vector<16x32xf32>
    %3 = tpu.matmul %0, %2, %cst {dimension_numbers = #tpu.dot_dimension_numbers<[1], [0], [0], [1], [0, 0, 1, 1], [], []>} : vector<16x32xf32>, vector<32x32xf32>, vector<16x32xf32> -> vector<16x32xf32>
    %c0_4 = arith.constant 0 : index
    %c0_5 = arith.constant 0 : index
    %c0_6 = arith.constant 0 : index
    %4 = vector.load %arg3[%c0_4, %c0_5, %c0_6] : memref<3x1x32xf32, #tpu.memory_space<vmem>>, vector<1x1x32xf32>
    %5 = vector.shape_cast %4 : vector<1x1x32xf32> to vector<1x32xf32>
    %6 = vector.broadcast %5 : vector<1x32xf32> to vector<16x32xf32>
    %7 = arith.addf %3, %6 : vector<16x32xf32>
    %c1 = arith.constant 1 : index
    %c0_7 = arith.constant 0 : index
    %c0_8 = arith.constant 0 : index
    %8 = vector.load %arg2[%c1, %c0_7, %c0_8] : memref<3x32x32xf32, #tpu.memory_space<vmem>>, vector<1x32x32xf32>
    %9 = vector.shape_cast %8 : vector<1x32x32xf32> to vector<32x32xf32>
    %cst_9 = arith.constant dense<0.000000e+00> : vector<16x32xf32>
    %10 = tpu.matmul %0, %9, %cst_9 {dimension_numbers = #tpu.dot_dimension_numbers<[1], [0], [0], [1], [0, 0, 1, 1], [], []>} : vector<16x32xf32>, vector<32x32xf32>, vector<16x32xf32> -> vector<16x32xf32>
    %c1_10 = arith.constant 1 : index
    %c0_11 = arith.constant 0 : index
    %c0_12 = arith.constant 0 : index
    %11 = vector.load %arg3[%c1_10, %c0_11, %c0_12] : memref<3x1x32xf32, #tpu.memory_space<vmem>>, vector<1x1x32xf32>
    %12 = vector.shape_cast %11 : vector<1x1x32xf32> to vector<1x32xf32>
    %13 = vector.broadcast %12 : vector<1x32xf32> to vector<16x32xf32>
    %14 = arith.addf %10, %13 : vector<16x32xf32>
    %c2 = arith.constant 2 : index
    %c0_13 = arith.constant 0 : index
    %c0_14 = arith.constant 0 : index
    %15 = vector.load %arg2[%c2, %c0_13, %c0_14] : memref<3x32x32xf32, #tpu.memory_space<vmem>>, vector<1x32x32xf32>
    %16 = vector.shape_cast %15 : vector<1x32x32xf32> to vector<32x32xf32>
    %cst_15 = arith.constant dense<0.000000e+00> : vector<16x32xf32>
    %17 = tpu.matmul %0, %16, %cst_15 {dimension_numbers = #tpu.dot_dimension_numbers<[1], [0], [0], [1], [0, 0, 1, 1], [], []>} : vector<16x32xf32>, vector<32x32xf32>, vector<16x32xf32> -> vector<16x32xf32>
    %c2_16 = arith.constant 2 : index
    %c0_17 = arith.constant 0 : index
    %c0_18 = arith.constant 0 : index
    %18 = vector.load %arg3[%c2_16, %c0_17, %c0_18] : memref<3x1x32xf32, #tpu.memory_space<vmem>>, vector<1x1x32xf32>
    %19 = vector.shape_cast %18 : vector<1x1x32xf32> to vector<1x32xf32>
    %20 = vector.broadcast %19 : vector<1x32xf32> to vector<16x32xf32>
    %21 = arith.addf %17, %20 : vector<16x32xf32>
    %cst_19 = arith.constant dense<0.000000e+00> : vector<16x16xf32>
    %22 = tpu.matmul %7, %14, %cst_19 {dimension_numbers = #tpu.dot_dimension_numbers<[1], [1], [0], [0], [0, 0, 1, 0], [], []>} : vector<16x32xf32>, vector<16x32xf32>, vector<16x16xf32> -> vector<16x16xf32>
    %c0_20 = arith.constant 0 : index
    %c0_21 = arith.constant 0 : index
    %23 = vector.load %arg13[%c0_20, %c0_21] : memref<16x16xf32, #tpu.memory_space<vmem>>, vector<16x16xf32>
    %c0_22 = arith.constant 0 : index
    %c0_23 = arith.constant 0 : index
    %c0_24 = arith.constant 0 : index
    %24 = vector.load %arg11[%c0_22, %c0_23, %c0_24] : memref<4x16x16xf32, #tpu.memory_space<vmem>>, vector<1x16x16xf32>
    %25 = vector.shape_cast %24 : vector<1x16x16xf32> to vector<16x16xf32>
    %26 = arith.mulf %22, %25 : vector<16x16xf32>
    %cst_25 = arith.constant dense<0.000000e+00> : vector<16xf32>
    %27 = vector.multi_reduction <add>, %26, %cst_25 [1] : vector<16x16xf32> to vector<16xf32>
    %28 = vector.shape_cast %27 : vector<16xf32> to vector<16x1xf32>
    %cst_26 = arith.constant dense<0.000000e+00> : vector<16x1xf32>
    %29 = tpu.matmul %23, %28, %cst_26 {dimension_numbers = #tpu.dot_dimension_numbers<[1], [0], [0], [1], [0, 0, 1, 1], [], []>} : vector<16x16xf32>, vector<16x1xf32>, vector<16x1xf32> -> vector<16x1xf32>
    %cst_27 = arith.constant 3.125000e-02 : f32
    %30 = vector.broadcast %cst_27 : f32 to vector<16x1xf32>
    %31 = arith.mulf %29, %30 : vector<16x1xf32>
    %c1_28 = arith.constant 1 : index
    %c0_29 = arith.constant 0 : index
    %c0_30 = arith.constant 0 : index
    %32 = vector.load %arg11[%c1_28, %c0_29, %c0_30] : memref<4x16x16xf32, #tpu.memory_space<vmem>>, vector<1x16x16xf32>
    %33 = vector.shape_cast %32 : vector<1x16x16xf32> to vector<16x16xf32>
    %34 = arith.mulf %22, %33 : vector<16x16xf32>
    %cst_31 = arith.constant dense<0.000000e+00> : vector<16xf32>
    %35 = vector.multi_reduction <add>, %34, %cst_31 [1] : vector<16x16xf32> to vector<16xf32>
    %36 = vector.shape_cast %35 : vector<16xf32> to vector<16x1xf32>
    %cst_32 = arith.constant dense<0.000000e+00> : vector<16x1xf32>
    %37 = tpu.matmul %23, %36, %cst_32 {dimension_numbers = #tpu.dot_dimension_numbers<[1], [0], [0], [1], [0, 0, 1, 1], [], []>} : vector<16x16xf32>, vector<16x1xf32>, vector<16x1xf32> -> vector<16x1xf32>
    %cst_33 = arith.constant 3.125000e-02 : f32
    %38 = vector.broadcast %cst_33 : f32 to vector<16x1xf32>
    %39 = arith.mulf %37, %38 : vector<16x1xf32>
    %c2_34 = arith.constant 2 : index
    %c0_35 = arith.constant 0 : index
    %c0_36 = arith.constant 0 : index
    %40 = vector.load %arg11[%c2_34, %c0_35, %c0_36] : memref<4x16x16xf32, #tpu.memory_space<vmem>>, vector<1x16x16xf32>
    %41 = vector.shape_cast %40 : vector<1x16x16xf32> to vector<16x16xf32>
    %42 = arith.mulf %22, %41 : vector<16x16xf32>
    %cst_37 = arith.constant dense<0.000000e+00> : vector<16xf32>
    %43 = vector.multi_reduction <add>, %42, %cst_37 [1] : vector<16x16xf32> to vector<16xf32>
    %44 = vector.shape_cast %43 : vector<16xf32> to vector<16x1xf32>
    %cst_38 = arith.constant dense<0.000000e+00> : vector<16x1xf32>
    %45 = tpu.matmul %23, %44, %cst_38 {dimension_numbers = #tpu.dot_dimension_numbers<[1], [0], [0], [1], [0, 0, 1, 1], [], []>} : vector<16x16xf32>, vector<16x1xf32>, vector<16x1xf32> -> vector<16x1xf32>
    %cst_39 = arith.constant 3.125000e-02 : f32
    %46 = vector.broadcast %cst_39 : f32 to vector<16x1xf32>
    %47 = arith.mulf %45, %46 : vector<16x1xf32>
    %c3 = arith.constant 3 : index
    %c0_40 = arith.constant 0 : index
    %c0_41 = arith.constant 0 : index
    %48 = vector.load %arg11[%c3, %c0_40, %c0_41] : memref<4x16x16xf32, #tpu.memory_space<vmem>>, vector<1x16x16xf32>
    %49 = vector.shape_cast %48 : vector<1x16x16xf32> to vector<16x16xf32>
    %50 = arith.mulf %22, %49 : vector<16x16xf32>
    %cst_42 = arith.constant dense<0.000000e+00> : vector<16xf32>
    %51 = vector.multi_reduction <add>, %50, %cst_42 [1] : vector<16x16xf32> to vector<16xf32>
    %52 = vector.shape_cast %51 : vector<16xf32> to vector<16x1xf32>
    %cst_43 = arith.constant dense<0.000000e+00> : vector<16x1xf32>
    %53 = tpu.matmul %23, %52, %cst_43 {dimension_numbers = #tpu.dot_dimension_numbers<[1], [0], [0], [1], [0, 0, 1, 1], [], []>} : vector<16x16xf32>, vector<16x1xf32>, vector<16x1xf32> -> vector<16x1xf32>
    %cst_44 = arith.constant 3.125000e-02 : f32
    %54 = vector.broadcast %cst_44 : f32 to vector<16x1xf32>
    %55 = arith.mulf %53, %54 : vector<16x1xf32>
    %56 = arith.maximumf %31, %39 : vector<16x1xf32>
    %57 = arith.maximumf %56, %47 : vector<16x1xf32>
    %58 = arith.maximumf %57, %55 : vector<16x1xf32>
    %59 = arith.cmpf oge, %31, %58 : vector<16x1xf32>
    %cst_45 = arith.constant -1.000000e+30 : f32
    %60 = vector.broadcast %cst_45 : f32 to vector<16x1xf32>
    %61 = arith.select %59, %31, %60 : vector<16x1xi1>, vector<16x1xf32>
    %62 = arith.cmpf oge, %39, %58 : vector<16x1xf32>
    %cst_46 = arith.constant -1.000000e+30 : f32
    %63 = vector.broadcast %cst_46 : f32 to vector<16x1xf32>
    %64 = arith.select %62, %39, %63 : vector<16x1xi1>, vector<16x1xf32>
    %65 = arith.cmpf oge, %47, %58 : vector<16x1xf32>
    %cst_47 = arith.constant -1.000000e+30 : f32
    %66 = vector.broadcast %cst_47 : f32 to vector<16x1xf32>
    %67 = arith.select %65, %47, %66 : vector<16x1xi1>, vector<16x1xf32>
    %68 = arith.cmpf oge, %55, %58 : vector<16x1xf32>
    %cst_48 = arith.constant -1.000000e+30 : f32
    %69 = vector.broadcast %cst_48 : f32 to vector<16x1xf32>
    %70 = arith.select %68, %55, %69 : vector<16x1xi1>, vector<16x1xf32>
    %71 = arith.maximumf %61, %64 : vector<16x1xf32>
    %72 = arith.maximumf %71, %67 : vector<16x1xf32>
    %73 = arith.maximumf %72, %70 : vector<16x1xf32>
    %74 = arith.subf %61, %73 : vector<16x1xf32>
    %75 = math.exp %74 : vector<16x1xf32>
    %76 = arith.subf %64, %73 : vector<16x1xf32>
    %77 = math.exp %76 : vector<16x1xf32>
    %78 = arith.subf %67, %73 : vector<16x1xf32>
    %79 = math.exp %78 : vector<16x1xf32>
    %80 = arith.subf %70, %73 : vector<16x1xf32>
    %81 = math.exp %80 : vector<16x1xf32>
    %82 = arith.addf %75, %77 : vector<16x1xf32>
    %83 = arith.addf %82, %79 : vector<16x1xf32>
    %84 = arith.addf %83, %81 : vector<16x1xf32>
    %85 = arith.divf %75, %84 : vector<16x1xf32>
    %86 = arith.divf %77, %84 : vector<16x1xf32>
    %87 = arith.divf %79, %84 : vector<16x1xf32>
    %88 = arith.divf %81, %84 : vector<16x1xf32>
    %c0_49 = arith.constant 0 : index
    %c0_50 = arith.constant 0 : index
    %c0_51 = arith.constant 0 : index
    %89 = vector.load %arg12[%c0_49, %c0_50, %c0_51] : memref<4x16x16xf32, #tpu.memory_space<vmem>>, vector<1x16x16xf32>
    %90 = vector.shape_cast %89 : vector<1x16x16xf32> to vector<16x16xf32>
    %91 = vector.broadcast %85 : vector<16x1xf32> to vector<16x16xf32>
    %92 = arith.mulf %91, %90 : vector<16x16xf32>
    %c1_52 = arith.constant 1 : index
    %c0_53 = arith.constant 0 : index
    %c0_54 = arith.constant 0 : index
    %93 = vector.load %arg12[%c1_52, %c0_53, %c0_54] : memref<4x16x16xf32, #tpu.memory_space<vmem>>, vector<1x16x16xf32>
    %94 = vector.shape_cast %93 : vector<1x16x16xf32> to vector<16x16xf32>
    %95 = vector.broadcast %86 : vector<16x1xf32> to vector<16x16xf32>
    %96 = arith.mulf %95, %94 : vector<16x16xf32>
    %97 = arith.addf %92, %96 : vector<16x16xf32>
    %c2_55 = arith.constant 2 : index
    %c0_56 = arith.constant 0 : index
    %c0_57 = arith.constant 0 : index
    %98 = vector.load %arg12[%c2_55, %c0_56, %c0_57] : memref<4x16x16xf32, #tpu.memory_space<vmem>>, vector<1x16x16xf32>
    %99 = vector.shape_cast %98 : vector<1x16x16xf32> to vector<16x16xf32>
    %100 = vector.broadcast %87 : vector<16x1xf32> to vector<16x16xf32>
    %101 = arith.mulf %100, %99 : vector<16x16xf32>
    %102 = arith.addf %97, %101 : vector<16x16xf32>
    %c3_58 = arith.constant 3 : index
    %c0_59 = arith.constant 0 : index
    %c0_60 = arith.constant 0 : index
    %103 = vector.load %arg12[%c3_58, %c0_59, %c0_60] : memref<4x16x16xf32, #tpu.memory_space<vmem>>, vector<1x16x16xf32>
    %104 = vector.shape_cast %103 : vector<1x16x16xf32> to vector<16x16xf32>
    %105 = vector.broadcast %88 : vector<16x1xf32> to vector<16x16xf32>
    %106 = arith.mulf %105, %104 : vector<16x16xf32>
    %107 = arith.addf %102, %106 : vector<16x16xf32>
    %cst_61 = arith.constant dense<0.000000e+00> : vector<16x32xf32>
    %108 = tpu.matmul %107, %21, %cst_61 {dimension_numbers = #tpu.dot_dimension_numbers<[1], [0], [0], [1], [0, 0, 1, 1], [], []>} : vector<16x16xf32>, vector<16x32xf32>, vector<16x32xf32> -> vector<16x32xf32>
    %c0_62 = arith.constant 0 : index
    %c0_63 = arith.constant 0 : index
    %109 = vector.load %arg6[%c0_62, %c0_63] : memref<32x32xf32, #tpu.memory_space<vmem>>, vector<32x32xf32>
    %cst_64 = arith.constant dense<0.000000e+00> : vector<16x32xf32>
    %110 = tpu.matmul %108, %109, %cst_64 {dimension_numbers = #tpu.dot_dimension_numbers<[1], [0], [0], [1], [0, 0, 1, 1], [], []>} : vector<16x32xf32>, vector<32x32xf32>, vector<16x32xf32> -> vector<16x32xf32>
    %c0_65 = arith.constant 0 : index
    %c0_66 = arith.constant 0 : index
    %111 = vector.load %arg15[%c0_65, %c0_66] : memref<16x16xf32, #tpu.memory_space<vmem>>, vector<16x16xf32>
    %c0_67 = arith.constant 0 : index
    %c0_68 = arith.constant 0 : index
    %c0_69 = arith.constant 0 : index
    %112 = vector.load %arg4[%c0_67, %c0_68, %c0_69] : memref<12x32x8xf32, #tpu.memory_space<vmem>>, vector<1x32x8xf32>
    %113 = vector.shape_cast %112 : vector<1x32x8xf32> to vector<32x8xf32>
    %cst_70 = arith.constant dense<0.000000e+00> : vector<16x8xf32>
    %114 = tpu.matmul %0, %113, %cst_70 {dimension_numbers = #tpu.dot_dimension_numbers<[1], [0], [0], [1], [0, 0, 1, 1], [], []>} : vector<16x32xf32>, vector<32x8xf32>, vector<16x8xf32> -> vector<16x8xf32>
    %c0_71 = arith.constant 0 : index
    %c0_72 = arith.constant 0 : index
    %c0_73 = arith.constant 0 : index
    %115 = vector.load %arg5[%c0_71, %c0_72, %c0_73] : memref<12x1x8xf32, #tpu.memory_space<vmem>>, vector<1x1x8xf32>
    %116 = vector.shape_cast %115 : vector<1x1x8xf32> to vector<1x8xf32>
    %117 = vector.broadcast %116 : vector<1x8xf32> to vector<16x8xf32>
    %118 = arith.addf %114, %117 : vector<16x8xf32>
    %c4 = arith.constant 4 : index
    %c0_74 = arith.constant 0 : index
    %c0_75 = arith.constant 0 : index
    %119 = vector.load %arg4[%c4, %c0_74, %c0_75] : memref<12x32x8xf32, #tpu.memory_space<vmem>>, vector<1x32x8xf32>
    %120 = vector.shape_cast %119 : vector<1x32x8xf32> to vector<32x8xf32>
    %cst_76 = arith.constant dense<0.000000e+00> : vector<16x8xf32>
    %121 = tpu.matmul %0, %120, %cst_76 {dimension_numbers = #tpu.dot_dimension_numbers<[1], [0], [0], [1], [0, 0, 1, 1], [], []>} : vector<16x32xf32>, vector<32x8xf32>, vector<16x8xf32> -> vector<16x8xf32>
    %c4_77 = arith.constant 4 : index
    %c0_78 = arith.constant 0 : index
    %c0_79 = arith.constant 0 : index
    %122 = vector.load %arg5[%c4_77, %c0_78, %c0_79] : memref<12x1x8xf32, #tpu.memory_space<vmem>>, vector<1x1x8xf32>
    %123 = vector.shape_cast %122 : vector<1x1x8xf32> to vector<1x8xf32>
    %124 = vector.broadcast %123 : vector<1x8xf32> to vector<16x8xf32>
    %125 = arith.addf %121, %124 : vector<16x8xf32>
    %c8 = arith.constant 8 : index
    %c0_80 = arith.constant 0 : index
    %c0_81 = arith.constant 0 : index
    %126 = vector.load %arg4[%c8, %c0_80, %c0_81] : memref<12x32x8xf32, #tpu.memory_space<vmem>>, vector<1x32x8xf32>
    %127 = vector.shape_cast %126 : vector<1x32x8xf32> to vector<32x8xf32>
    %cst_82 = arith.constant dense<0.000000e+00> : vector<16x8xf32>
    %128 = tpu.matmul %0, %127, %cst_82 {dimension_numbers = #tpu.dot_dimension_numbers<[1], [0], [0], [1], [0, 0, 1, 1], [], []>} : vector<16x32xf32>, vector<32x8xf32>, vector<16x8xf32> -> vector<16x8xf32>
    %c8_83 = arith.constant 8 : index
    %c0_84 = arith.constant 0 : index
    %c0_85 = arith.constant 0 : index
    %129 = vector.load %arg5[%c8_83, %c0_84, %c0_85] : memref<12x1x8xf32, #tpu.memory_space<vmem>>, vector<1x1x8xf32>
    %130 = vector.shape_cast %129 : vector<1x1x8xf32> to vector<1x8xf32>
    %131 = vector.broadcast %130 : vector<1x8xf32> to vector<16x8xf32>
    %132 = arith.addf %128, %131 : vector<16x8xf32>
    %cst_86 = arith.constant dense<0.000000e+00> : vector<16x16xf32>
    %133 = tpu.matmul %118, %125, %cst_86 {dimension_numbers = #tpu.dot_dimension_numbers<[1], [1], [0], [0], [0, 0, 1, 0], [], []>} : vector<16x8xf32>, vector<16x8xf32>, vector<16x16xf32> -> vector<16x16xf32>
    %cst_87 = arith.constant 0.353553385 : f32
    %134 = vector.broadcast %cst_87 : f32 to vector<16x16xf32>
    %135 = arith.mulf %133, %134 : vector<16x16xf32>
    %136 = arith.addf %135, %111 : vector<16x16xf32>
    %cst_88 = arith.constant dense<0xFF800000> : vector<16xf32>
    %137 = vector.multi_reduction <maximumf>, %136, %cst_88 [1] : vector<16x16xf32> to vector<16xf32>
    %138 = vector.shape_cast %137 : vector<16xf32> to vector<16x1xf32>
    %139 = vector.broadcast %138 : vector<16x1xf32> to vector<16x16xf32>
    %140 = arith.subf %136, %139 : vector<16x16xf32>
    %141 = math.exp %140 : vector<16x16xf32>
    %cst_89 = arith.constant dense<0.000000e+00> : vector<16xf32>
    %142 = vector.multi_reduction <add>, %141, %cst_89 [1] : vector<16x16xf32> to vector<16xf32>
    %143 = vector.shape_cast %142 : vector<16xf32> to vector<16x1xf32>
    %144 = vector.broadcast %143 : vector<16x1xf32> to vector<16x16xf32>
    %145 = arith.divf %141, %144 : vector<16x16xf32>
    %cst_90 = arith.constant dense<0.000000e+00> : vector<16x8xf32>
    %146 = tpu.matmul %145, %132, %cst_90 {dimension_numbers = #tpu.dot_dimension_numbers<[1], [0], [0], [1], [0, 0, 1, 1], [], []>} : vector<16x16xf32>, vector<16x8xf32>, vector<16x8xf32> -> vector<16x8xf32>
    %c0_91 = arith.constant 0 : index
    %c0_92 = arith.constant 0 : index
    %c0_93 = arith.constant 0 : index
    %147 = vector.load %arg7[%c0_91, %c0_92, %c0_93] : memref<4x8x32xf32, #tpu.memory_space<vmem>>, vector<1x8x32xf32>
    %148 = vector.shape_cast %147 : vector<1x8x32xf32> to vector<8x32xf32>
    %cst_94 = arith.constant dense<0.000000e+00> : vector<16x32xf32>
    %149 = tpu.matmul %146, %148, %cst_94 {dimension_numbers = #tpu.dot_dimension_numbers<[1], [0], [0], [1], [0, 0, 1, 1], [], []>} : vector<16x8xf32>, vector<8x32xf32>, vector<16x32xf32> -> vector<16x32xf32>
    %150 = arith.addf %110, %149 : vector<16x32xf32>
    %c1_95 = arith.constant 1 : index
    %c0_96 = arith.constant 0 : index
    %c0_97 = arith.constant 0 : index
    %151 = vector.load %arg4[%c1_95, %c0_96, %c0_97] : memref<12x32x8xf32, #tpu.memory_space<vmem>>, vector<1x32x8xf32>
    %152 = vector.shape_cast %151 : vector<1x32x8xf32> to vector<32x8xf32>
    %cst_98 = arith.constant dense<0.000000e+00> : vector<16x8xf32>
    %153 = tpu.matmul %0, %152, %cst_98 {dimension_numbers = #tpu.dot_dimension_numbers<[1], [0], [0], [1], [0, 0, 1, 1], [], []>} : vector<16x32xf32>, vector<32x8xf32>, vector<16x8xf32> -> vector<16x8xf32>
    %c1_99 = arith.constant 1 : index
    %c0_100 = arith.constant 0 : index
    %c0_101 = arith.constant 0 : index
    %154 = vector.load %arg5[%c1_99, %c0_100, %c0_101] : memref<12x1x8xf32, #tpu.memory_space<vmem>>, vector<1x1x8xf32>
    %155 = vector.shape_cast %154 : vector<1x1x8xf32> to vector<1x8xf32>
    %156 = vector.broadcast %155 : vector<1x8xf32> to vector<16x8xf32>
    %157 = arith.addf %153, %156 : vector<16x8xf32>
    %c5 = arith.constant 5 : index
    %c0_102 = arith.constant 0 : index
    %c0_103 = arith.constant 0 : index
    %158 = vector.load %arg4[%c5, %c0_102, %c0_103] : memref<12x32x8xf32, #tpu.memory_space<vmem>>, vector<1x32x8xf32>
    %159 = vector.shape_cast %158 : vector<1x32x8xf32> to vector<32x8xf32>
    %cst_104 = arith.constant dense<0.000000e+00> : vector<16x8xf32>
    %160 = tpu.matmul %0, %159, %cst_104 {dimension_numbers = #tpu.dot_dimension_numbers<[1], [0], [0], [1], [0, 0, 1, 1], [], []>} : vector<16x32xf32>, vector<32x8xf32>, vector<16x8xf32> -> vector<16x8xf32>
    %c5_105 = arith.constant 5 : index
    %c0_106 = arith.constant 0 : index
    %c0_107 = arith.constant 0 : index
    %161 = vector.load %arg5[%c5_105, %c0_106, %c0_107] : memref<12x1x8xf32, #tpu.memory_space<vmem>>, vector<1x1x8xf32>
    %162 = vector.shape_cast %161 : vector<1x1x8xf32> to vector<1x8xf32>
    %163 = vector.broadcast %162 : vector<1x8xf32> to vector<16x8xf32>
    %164 = arith.addf %160, %163 : vector<16x8xf32>
    %c9 = arith.constant 9 : index
    %c0_108 = arith.constant 0 : index
    %c0_109 = arith.constant 0 : index
    %165 = vector.load %arg4[%c9, %c0_108, %c0_109] : memref<12x32x8xf32, #tpu.memory_space<vmem>>, vector<1x32x8xf32>
    %166 = vector.shape_cast %165 : vector<1x32x8xf32> to vector<32x8xf32>
    %cst_110 = arith.constant dense<0.000000e+00> : vector<16x8xf32>
    %167 = tpu.matmul %0, %166, %cst_110 {dimension_numbers = #tpu.dot_dimension_numbers<[1], [0], [0], [1], [0, 0, 1, 1], [], []>} : vector<16x32xf32>, vector<32x8xf32>, vector<16x8xf32> -> vector<16x8xf32>
    %c9_111 = arith.constant 9 : index
    %c0_112 = arith.constant 0 : index
    %c0_113 = arith.constant 0 : index
    %168 = vector.load %arg5[%c9_111, %c0_112, %c0_113] : memref<12x1x8xf32, #tpu.memory_space<vmem>>, vector<1x1x8xf32>
    %169 = vector.shape_cast %168 : vector<1x1x8xf32> to vector<1x8xf32>
    %170 = vector.broadcast %169 : vector<1x8xf32> to vector<16x8xf32>
    %171 = arith.addf %167, %170 : vector<16x8xf32>
    %cst_114 = arith.constant dense<0.000000e+00> : vector<16x16xf32>
    %172 = tpu.matmul %157, %164, %cst_114 {dimension_numbers = #tpu.dot_dimension_numbers<[1], [1], [0], [0], [0, 0, 1, 0], [], []>} : vector<16x8xf32>, vector<16x8xf32>, vector<16x16xf32> -> vector<16x16xf32>
    %cst_115 = arith.constant 0.353553385 : f32
    %173 = vector.broadcast %cst_115 : f32 to vector<16x16xf32>
    %174 = arith.mulf %172, %173 : vector<16x16xf32>
    %175 = arith.addf %174, %111 : vector<16x16xf32>
    %cst_116 = arith.constant dense<0xFF800000> : vector<16xf32>
    %176 = vector.multi_reduction <maximumf>, %175, %cst_116 [1] : vector<16x16xf32> to vector<16xf32>
    %177 = vector.shape_cast %176 : vector<16xf32> to vector<16x1xf32>
    %178 = vector.broadcast %177 : vector<16x1xf32> to vector<16x16xf32>
    %179 = arith.subf %175, %178 : vector<16x16xf32>
    %180 = math.exp %179 : vector<16x16xf32>
    %cst_117 = arith.constant dense<0.000000e+00> : vector<16xf32>
    %181 = vector.multi_reduction <add>, %180, %cst_117 [1] : vector<16x16xf32> to vector<16xf32>
    %182 = vector.shape_cast %181 : vector<16xf32> to vector<16x1xf32>
    %183 = vector.broadcast %182 : vector<16x1xf32> to vector<16x16xf32>
    %184 = arith.divf %180, %183 : vector<16x16xf32>
    %cst_118 = arith.constant dense<0.000000e+00> : vector<16x8xf32>
    %185 = tpu.matmul %184, %171, %cst_118 {dimension_numbers = #tpu.dot_dimension_numbers<[1], [0], [0], [1], [0, 0, 1, 1], [], []>} : vector<16x16xf32>, vector<16x8xf32>, vector<16x8xf32> -> vector<16x8xf32>
    %c1_119 = arith.constant 1 : index
    %c0_120 = arith.constant 0 : index
    %c0_121 = arith.constant 0 : index
    %186 = vector.load %arg7[%c1_119, %c0_120, %c0_121] : memref<4x8x32xf32, #tpu.memory_space<vmem>>, vector<1x8x32xf32>
    %187 = vector.shape_cast %186 : vector<1x8x32xf32> to vector<8x32xf32>
    %cst_122 = arith.constant dense<0.000000e+00> : vector<16x32xf32>
    %188 = tpu.matmul %185, %187, %cst_122 {dimension_numbers = #tpu.dot_dimension_numbers<[1], [0], [0], [1], [0, 0, 1, 1], [], []>} : vector<16x8xf32>, vector<8x32xf32>, vector<16x32xf32> -> vector<16x32xf32>
    %189 = arith.addf %150, %188 : vector<16x32xf32>
    %c2_123 = arith.constant 2 : index
    %c0_124 = arith.constant 0 : index
    %c0_125 = arith.constant 0 : index
    %190 = vector.load %arg4[%c2_123, %c0_124, %c0_125] : memref<12x32x8xf32, #tpu.memory_space<vmem>>, vector<1x32x8xf32>
    %191 = vector.shape_cast %190 : vector<1x32x8xf32> to vector<32x8xf32>
    %cst_126 = arith.constant dense<0.000000e+00> : vector<16x8xf32>
    %192 = tpu.matmul %0, %191, %cst_126 {dimension_numbers = #tpu.dot_dimension_numbers<[1], [0], [0], [1], [0, 0, 1, 1], [], []>} : vector<16x32xf32>, vector<32x8xf32>, vector<16x8xf32> -> vector<16x8xf32>
    %c2_127 = arith.constant 2 : index
    %c0_128 = arith.constant 0 : index
    %c0_129 = arith.constant 0 : index
    %193 = vector.load %arg5[%c2_127, %c0_128, %c0_129] : memref<12x1x8xf32, #tpu.memory_space<vmem>>, vector<1x1x8xf32>
    %194 = vector.shape_cast %193 : vector<1x1x8xf32> to vector<1x8xf32>
    %195 = vector.broadcast %194 : vector<1x8xf32> to vector<16x8xf32>
    %196 = arith.addf %192, %195 : vector<16x8xf32>
    %c6 = arith.constant 6 : index
    %c0_130 = arith.constant 0 : index
    %c0_131 = arith.constant 0 : index
    %197 = vector.load %arg4[%c6, %c0_130, %c0_131] : memref<12x32x8xf32, #tpu.memory_space<vmem>>, vector<1x32x8xf32>
    %198 = vector.shape_cast %197 : vector<1x32x8xf32> to vector<32x8xf32>
    %cst_132 = arith.constant dense<0.000000e+00> : vector<16x8xf32>
    %199 = tpu.matmul %0, %198, %cst_132 {dimension_numbers = #tpu.dot_dimension_numbers<[1], [0], [0], [1], [0, 0, 1, 1], [], []>} : vector<16x32xf32>, vector<32x8xf32>, vector<16x8xf32> -> vector<16x8xf32>
    %c6_133 = arith.constant 6 : index
    %c0_134 = arith.constant 0 : index
    %c0_135 = arith.constant 0 : index
    %200 = vector.load %arg5[%c6_133, %c0_134, %c0_135] : memref<12x1x8xf32, #tpu.memory_space<vmem>>, vector<1x1x8xf32>
    %201 = vector.shape_cast %200 : vector<1x1x8xf32> to vector<1x8xf32>
    %202 = vector.broadcast %201 : vector<1x8xf32> to vector<16x8xf32>
    %203 = arith.addf %199, %202 : vector<16x8xf32>
    %c10 = arith.constant 10 : index
    %c0_136 = arith.constant 0 : index
    %c0_137 = arith.constant 0 : index
    %204 = vector.load %arg4[%c10, %c0_136, %c0_137] : memref<12x32x8xf32, #tpu.memory_space<vmem>>, vector<1x32x8xf32>
    %205 = vector.shape_cast %204 : vector<1x32x8xf32> to vector<32x8xf32>
    %cst_138 = arith.constant dense<0.000000e+00> : vector<16x8xf32>
    %206 = tpu.matmul %0, %205, %cst_138 {dimension_numbers = #tpu.dot_dimension_numbers<[1], [0], [0], [1], [0, 0, 1, 1], [], []>} : vector<16x32xf32>, vector<32x8xf32>, vector<16x8xf32> -> vector<16x8xf32>
    %c10_139 = arith.constant 10 : index
    %c0_140 = arith.constant 0 : index
    %c0_141 = arith.constant 0 : index
    %207 = vector.load %arg5[%c10_139, %c0_140, %c0_141] : memref<12x1x8xf32, #tpu.memory_space<vmem>>, vector<1x1x8xf32>
    %208 = vector.shape_cast %207 : vector<1x1x8xf32> to vector<1x8xf32>
    %209 = vector.broadcast %208 : vector<1x8xf32> to vector<16x8xf32>
    %210 = arith.addf %206, %209 : vector<16x8xf32>
    %cst_142 = arith.constant dense<0.000000e+00> : vector<16x16xf32>
    %211 = tpu.matmul %196, %203, %cst_142 {dimension_numbers = #tpu.dot_dimension_numbers<[1], [1], [0], [0], [0, 0, 1, 0], [], []>} : vector<16x8xf32>, vector<16x8xf32>, vector<16x16xf32> -> vector<16x16xf32>
    %cst_143 = arith.constant 0.353553385 : f32
    %212 = vector.broadcast %cst_143 : f32 to vector<16x16xf32>
    %213 = arith.mulf %211, %212 : vector<16x16xf32>
    %214 = arith.addf %213, %111 : vector<16x16xf32>
    %cst_144 = arith.constant dense<0xFF800000> : vector<16xf32>
    %215 = vector.multi_reduction <maximumf>, %214, %cst_144 [1] : vector<16x16xf32> to vector<16xf32>
    %216 = vector.shape_cast %215 : vector<16xf32> to vector<16x1xf32>
    %217 = vector.broadcast %216 : vector<16x1xf32> to vector<16x16xf32>
    %218 = arith.subf %214, %217 : vector<16x16xf32>
    %219 = math.exp %218 : vector<16x16xf32>
    %cst_145 = arith.constant dense<0.000000e+00> : vector<16xf32>
    %220 = vector.multi_reduction <add>, %219, %cst_145 [1] : vector<16x16xf32> to vector<16xf32>
    %221 = vector.shape_cast %220 : vector<16xf32> to vector<16x1xf32>
    %222 = vector.broadcast %221 : vector<16x1xf32> to vector<16x16xf32>
    %223 = arith.divf %219, %222 : vector<16x16xf32>
    %cst_146 = arith.constant dense<0.000000e+00> : vector<16x8xf32>
    %224 = tpu.matmul %223, %210, %cst_146 {dimension_numbers = #tpu.dot_dimension_numbers<[1], [0], [0], [1], [0, 0, 1, 1], [], []>} : vector<16x16xf32>, vector<16x8xf32>, vector<16x8xf32> -> vector<16x8xf32>
    %c2_147 = arith.constant 2 : index
    %c0_148 = arith.constant 0 : index
    %c0_149 = arith.constant 0 : index
    %225 = vector.load %arg7[%c2_147, %c0_148, %c0_149] : memref<4x8x32xf32, #tpu.memory_space<vmem>>, vector<1x8x32xf32>
    %226 = vector.shape_cast %225 : vector<1x8x32xf32> to vector<8x32xf32>
    %cst_150 = arith.constant dense<0.000000e+00> : vector<16x32xf32>
    %227 = tpu.matmul %224, %226, %cst_150 {dimension_numbers = #tpu.dot_dimension_numbers<[1], [0], [0], [1], [0, 0, 1, 1], [], []>} : vector<16x8xf32>, vector<8x32xf32>, vector<16x32xf32> -> vector<16x32xf32>
    %228 = arith.addf %189, %227 : vector<16x32xf32>
    %c3_151 = arith.constant 3 : index
    %c0_152 = arith.constant 0 : index
    %c0_153 = arith.constant 0 : index
    %229 = vector.load %arg4[%c3_151, %c0_152, %c0_153] : memref<12x32x8xf32, #tpu.memory_space<vmem>>, vector<1x32x8xf32>
    %230 = vector.shape_cast %229 : vector<1x32x8xf32> to vector<32x8xf32>
    %cst_154 = arith.constant dense<0.000000e+00> : vector<16x8xf32>
    %231 = tpu.matmul %0, %230, %cst_154 {dimension_numbers = #tpu.dot_dimension_numbers<[1], [0], [0], [1], [0, 0, 1, 1], [], []>} : vector<16x32xf32>, vector<32x8xf32>, vector<16x8xf32> -> vector<16x8xf32>
    %c3_155 = arith.constant 3 : index
    %c0_156 = arith.constant 0 : index
    %c0_157 = arith.constant 0 : index
    %232 = vector.load %arg5[%c3_155, %c0_156, %c0_157] : memref<12x1x8xf32, #tpu.memory_space<vmem>>, vector<1x1x8xf32>
    %233 = vector.shape_cast %232 : vector<1x1x8xf32> to vector<1x8xf32>
    %234 = vector.broadcast %233 : vector<1x8xf32> to vector<16x8xf32>
    %235 = arith.addf %231, %234 : vector<16x8xf32>
    %c7 = arith.constant 7 : index
    %c0_158 = arith.constant 0 : index
    %c0_159 = arith.constant 0 : index
    %236 = vector.load %arg4[%c7, %c0_158, %c0_159] : memref<12x32x8xf32, #tpu.memory_space<vmem>>, vector<1x32x8xf32>
    %237 = vector.shape_cast %236 : vector<1x32x8xf32> to vector<32x8xf32>
    %cst_160 = arith.constant dense<0.000000e+00> : vector<16x8xf32>
    %238 = tpu.matmul %0, %237, %cst_160 {dimension_numbers = #tpu.dot_dimension_numbers<[1], [0], [0], [1], [0, 0, 1, 1], [], []>} : vector<16x32xf32>, vector<32x8xf32>, vector<16x8xf32> -> vector<16x8xf32>
    %c7_161 = arith.constant 7 : index
    %c0_162 = arith.constant 0 : index
    %c0_163 = arith.constant 0 : index
    %239 = vector.load %arg5[%c7_161, %c0_162, %c0_163] : memref<12x1x8xf32, #tpu.memory_space<vmem>>, vector<1x1x8xf32>
    %240 = vector.shape_cast %239 : vector<1x1x8xf32> to vector<1x8xf32>
    %241 = vector.broadcast %240 : vector<1x8xf32> to vector<16x8xf32>
    %242 = arith.addf %238, %241 : vector<16x8xf32>
    %c11 = arith.constant 11 : index
    %c0_164 = arith.constant 0 : index
    %c0_165 = arith.constant 0 : index
    %243 = vector.load %arg4[%c11, %c0_164, %c0_165] : memref<12x32x8xf32, #tpu.memory_space<vmem>>, vector<1x32x8xf32>
    %244 = vector.shape_cast %243 : vector<1x32x8xf32> to vector<32x8xf32>
    %cst_166 = arith.constant dense<0.000000e+00> : vector<16x8xf32>
    %245 = tpu.matmul %0, %244, %cst_166 {dimension_numbers = #tpu.dot_dimension_numbers<[1], [0], [0], [1], [0, 0, 1, 1], [], []>} : vector<16x32xf32>, vector<32x8xf32>, vector<16x8xf32> -> vector<16x8xf32>
    %c11_167 = arith.constant 11 : index
    %c0_168 = arith.constant 0 : index
    %c0_169 = arith.constant 0 : index
    %246 = vector.load %arg5[%c11_167, %c0_168, %c0_169] : memref<12x1x8xf32, #tpu.memory_space<vmem>>, vector<1x1x8xf32>
    %247 = vector.shape_cast %246 : vector<1x1x8xf32> to vector<1x8xf32>
    %248 = vector.broadcast %247 : vector<1x8xf32> to vector<16x8xf32>
    %249 = arith.addf %245, %248 : vector<16x8xf32>
    %cst_170 = arith.constant dense<0.000000e+00> : vector<16x16xf32>
    %250 = tpu.matmul %235, %242, %cst_170 {dimension_numbers = #tpu.dot_dimension_numbers<[1], [1], [0], [0], [0, 0, 1, 0], [], []>} : vector<16x8xf32>, vector<16x8xf32>, vector<16x16xf32> -> vector<16x16xf32>
    %cst_171 = arith.constant 0.353553385 : f32
    %251 = vector.broadcast %cst_171 : f32 to vector<16x16xf32>
    %252 = arith.mulf %250, %251 : vector<16x16xf32>
    %253 = arith.addf %252, %111 : vector<16x16xf32>
    %cst_172 = arith.constant dense<0xFF800000> : vector<16xf32>
    %254 = vector.multi_reduction <maximumf>, %253, %cst_172 [1] : vector<16x16xf32> to vector<16xf32>
    %255 = vector.shape_cast %254 : vector<16xf32> to vector<16x1xf32>
    %256 = vector.broadcast %255 : vector<16x1xf32> to vector<16x16xf32>
    %257 = arith.subf %253, %256 : vector<16x16xf32>
    %258 = math.exp %257 : vector<16x16xf32>
    %cst_173 = arith.constant dense<0.000000e+00> : vector<16xf32>
    %259 = vector.multi_reduction <add>, %258, %cst_173 [1] : vector<16x16xf32> to vector<16xf32>
    %260 = vector.shape_cast %259 : vector<16xf32> to vector<16x1xf32>
    %261 = vector.broadcast %260 : vector<16x1xf32> to vector<16x16xf32>
    %262 = arith.divf %258, %261 : vector<16x16xf32>
    %cst_174 = arith.constant dense<0.000000e+00> : vector<16x8xf32>
    %263 = tpu.matmul %262, %249, %cst_174 {dimension_numbers = #tpu.dot_dimension_numbers<[1], [0], [0], [1], [0, 0, 1, 1], [], []>} : vector<16x16xf32>, vector<16x8xf32>, vector<16x8xf32> -> vector<16x8xf32>
    %c3_175 = arith.constant 3 : index
    %c0_176 = arith.constant 0 : index
    %c0_177 = arith.constant 0 : index
    %264 = vector.load %arg7[%c3_175, %c0_176, %c0_177] : memref<4x8x32xf32, #tpu.memory_space<vmem>>, vector<1x8x32xf32>
    %265 = vector.shape_cast %264 : vector<1x8x32xf32> to vector<8x32xf32>
    %cst_178 = arith.constant dense<0.000000e+00> : vector<16x32xf32>
    %266 = tpu.matmul %263, %265, %cst_178 {dimension_numbers = #tpu.dot_dimension_numbers<[1], [0], [0], [1], [0, 0, 1, 1], [], []>} : vector<16x8xf32>, vector<8x32xf32>, vector<16x32xf32> -> vector<16x32xf32>
    %267 = arith.addf %228, %266 : vector<16x32xf32>
    %c0_179 = arith.constant 0 : index
    %c0_180 = arith.constant 0 : index
    %268 = vector.load %arg8[%c0_179, %c0_180] : memref<1x32xf32, #tpu.memory_space<vmem>>, vector<1x32xf32>
    %269 = vector.broadcast %268 : vector<1x32xf32> to vector<16x32xf32>
    %270 = arith.addf %267, %269 : vector<16x32xf32>
    %c0_181 = arith.constant 0 : index
    %c0_182 = arith.constant 0 : index
    %271 = vector.load %arg14[%c0_181, %c0_182] : memref<16x16xf32, #tpu.memory_space<vmem>>, vector<16x16xf32>
    %272 = arith.addf %0, %270 : vector<16x32xf32>
    %cst_183 = arith.constant dense<0.000000e+00> : vector<16x32xf32>
    %273 = tpu.matmul %271, %272, %cst_183 {dimension_numbers = #tpu.dot_dimension_numbers<[1], [0], [0], [1], [0, 0, 1, 1], [], []>} : vector<16x16xf32>, vector<16x32xf32>, vector<16x32xf32> -> vector<16x32xf32>
    %c0_184 = arith.constant 0 : index
    %c0_185 = arith.constant 0 : index
    %274 = vector.load %arg9[%c0_184, %c0_185] : memref<32x64xf32, #tpu.memory_space<vmem>>, vector<32x64xf32>
    %cst_186 = arith.constant dense<0.000000e+00> : vector<16x64xf32>
    %275 = tpu.matmul %273, %274, %cst_186 {dimension_numbers = #tpu.dot_dimension_numbers<[1], [0], [0], [1], [0, 0, 1, 1], [], []>} : vector<16x32xf32>, vector<32x64xf32>, vector<16x64xf32> -> vector<16x64xf32>
    %cst_187 = arith.constant 0.000000e+00 : f32
    %276 = vector.broadcast %cst_187 : f32 to vector<16x64xf32>
    %277 = arith.maximumf %275, %276 : vector<16x64xf32>
    %c0_188 = arith.constant 0 : index
    %c0_189 = arith.constant 0 : index
    %278 = vector.load %arg10[%c0_188, %c0_189] : memref<64x32xf32, #tpu.memory_space<vmem>>, vector<64x32xf32>
    %cst_190 = arith.constant dense<0.000000e+00> : vector<16x32xf32>
    %279 = tpu.matmul %277, %278, %cst_190 {dimension_numbers = #tpu.dot_dimension_numbers<[1], [0], [0], [1], [0, 0, 1, 1], [], []>} : vector<16x64xf32>, vector<64x32xf32>, vector<16x32xf32> -> vector<16x32xf32>
    %c0_191 = arith.constant 0 : index
    %c0_192 = arith.constant 0 : index
    %280 = vector.load %arg14[%c0_191, %c0_192] : memref<16x16xf32, #tpu.memory_space<vmem>>, vector<16x16xf32>
    %281 = arith.addf %273, %279 : vector<16x32xf32>
    %cst_193 = arith.constant dense<0.000000e+00> : vector<16x32xf32>
    %282 = tpu.matmul %280, %281, %cst_193 {dimension_numbers = #tpu.dot_dimension_numbers<[1], [0], [0], [1], [0, 0, 1, 1], [], []>} : vector<16x16xf32>, vector<16x32xf32>, vector<16x32xf32> -> vector<16x32xf32>
    %c0_194 = arith.constant 0 : index
    %c0_195 = arith.constant 0 : index
    %283 = vector.load %arg16[%c0_194, %c0_195] : memref<16x32xf32, #tpu.memory_space<vmem>>, vector<16x32xf32>
    tpu.vector_store %arg16[%c0_194, %c0_195], %282 {strides = array<i32>} : memref<16x32xf32, #tpu.memory_space<vmem>>, vector<16x32xf32>,
    return
  }
  func.func @transform_0(%arg0: i32) -> (i32, i32) {
    %c0_i32 = arith.constant 0 : i32
    %c0_i32_0 = arith.constant 0 : i32
    return %arg0, %c0_i32 : i32, i32
  }
  func.func @transform_1(%arg0: i32) -> (i32, i32, i32) {
    %c0_i32 = arith.constant 0 : i32
    %c0_i32_0 = arith.constant 0 : i32
    %c0_i32_1 = arith.constant 0 : i32
    %c0_i32_2 = arith.constant 0 : i32
    return %c0_i32, %c0_i32_0, %c0_i32_1 : i32, i32, i32
  }
  func.func @transform_2(%arg0: i32) -> (i32, i32, i32) {
    %c0_i32 = arith.constant 0 : i32
    %c0_i32_0 = arith.constant 0 : i32
    %c0_i32_1 = arith.constant 0 : i32
    %c0_i32_2 = arith.constant 0 : i32
    return %c0_i32, %c0_i32_0, %c0_i32_1 : i32, i32, i32
  }
  func.func @transform_3(%arg0: i32) -> (i32, i32, i32) {
    %c0_i32 = arith.constant 0 : i32
    %c0_i32_0 = arith.constant 0 : i32
    %c0_i32_1 = arith.constant 0 : i32
    %c0_i32_2 = arith.constant 0 : i32
    return %c0_i32, %c0_i32_0, %c0_i32_1 : i32, i32, i32
  }
  func.func @transform_4(%arg0: i32) -> (i32, i32, i32) {
    %c0_i32 = arith.constant 0 : i32
    %c0_i32_0 = arith.constant 0 : i32
    %c0_i32_1 = arith.constant 0 : i32
    %c0_i32_2 = arith.constant 0 : i32
    return %c0_i32, %c0_i32_0, %c0_i32_1 : i32, i32, i32
  }
  func.func @transform_5(%arg0: i32) -> (i32, i32) {
    %c0_i32 = arith.constant 0 : i32
    %c0_i32_0 = arith.constant 0 : i32
    %c0_i32_1 = arith.constant 0 : i32
    return %c0_i32, %c0_i32_0 : i32, i32
  }
  func.func @transform_6(%arg0: i32) -> (i32, i32, i32) {
    %c0_i32 = arith.constant 0 : i32
    %c0_i32_0 = arith.constant 0 : i32
    %c0_i32_1 = arith.constant 0 : i32
    %c0_i32_2 = arith.constant 0 : i32
    return %c0_i32, %c0_i32_0, %c0_i32_1 : i32, i32, i32
  }
  func.func @transform_7(%arg0: i32) -> (i32, i32) {
    %c0_i32 = arith.constant 0 : i32
    %c0_i32_0 = arith.constant 0 : i32
    %c0_i32_1 = arith.constant 0 : i32
    return %c0_i32, %c0_i32_0 : i32, i32
  }
  func.func @transform_8(%arg0: i32) -> (i32, i32) {
    %c0_i32 = arith.constant 0 : i32
    %c0_i32_0 = arith.constant 0 : i32
    %c0_i32_1 = arith.constant 0 : i32
    return %c0_i32, %c0_i32_0 : i32, i32
  }
  func.func @transform_9(%arg0: i32) -> (i32, i32) {
    %c0_i32 = arith.constant 0 : i32
    %c0_i32_0 = arith.constant 0 : i32
    %c0_i32_1 = arith.constant 0 : i32
    return %c0_i32, %c0_i32_0 : i32, i32
  }
  func.func @transform_10(%arg0: i32) -> (i32, i32, i32) {
    %c0_i32 = arith.constant 0 : i32
    %c0_i32_0 = arith.constant 0 : i32
    %c0_i32_1 = arith.constant 0 : i32
    %c0_i32_2 = arith.constant 0 : i32
    return %c0_i32, %c0_i32_0, %c0_i32_1 : i32, i32, i32
  }
  func.func @transform_11(%arg0: i32) -> (i32, i32, i32) {
    %c0_i32 = arith.constant 0 : i32
    %c0_i32_0 = arith.constant 0 : i32
    %c0_i32_1 = arith.constant 0 : i32
    %c0_i32_2 = arith.constant 0 : i32
    return %c0_i32, %c0_i32_0, %c0_i32_1 : i32, i32, i32
  }
  func.func @transform_12(%arg0: i32) -> (i32, i32) {
    %c0_i32 = arith.constant 0 : i32
    %c0_i32_0 = arith.constant 0 : i32
    %c0_i32_1 = arith.constant 0 : i32
    return %c0_i32, %c0_i32_0 : i32, i32
  }
  func.func @transform_13(%arg0: i32) -> (i32, i32) {
    %c0_i32 = arith.constant 0 : i32
    %c0_i32_0 = arith.constant 0 : i32
    %c0_i32_1 = arith.constant 0 : i32
    return %c0_i32, %c0_i32_0 : i32, i32
  }
  func.func @transform_14(%arg0: i32) -> (i32, i32) {
    %c0_i32 = arith.constant 0 : i32
    %c0_i32_0 = arith.constant 0 : i32
    %c0_i32_1 = arith.constant 0 : i32
    return %c0_i32, %c0_i32_0 : i32, i32
  }
  func.func @transform_15(%arg0: i32) -> (i32, i32) {
    %c0_i32 = arith.constant 0 : i32
    %c0_i32_0 = arith.constant 0 : i32
    return %arg0, %c0_i32 : i32, i32
  }
}

</mosaic_0001>

<bundles_post_ra>
// kernel: _lambda_.7
= control target key start
LH: loop header
LB: loop body
LE: loop exit
PB: predicated region body
PF: predicated region fallthrough
CT: control target
= control target key end

     0   :  { %v169_v0 = vmov 0.0   ;;  %vm170_vm0 = vmmov 0   ;;  %vm108_vm1 = vcmask 64512   ;;  %s248_s1 = inlined_call_operand.vmem [shape: f32[128,8], index: 1, kind: input, shape index: {}]   ;;  %s249_s0 = inlined_call_operand.vmem [shape: f32[8,128], index: 0, kind: input, shape index: {}]   ;;  %s250_s2 = inlined_call_operand.vmem [shape: f32[1,8], index: 2, kind: input, shape index: {}]   ;;  %s251_s3 = inlined_call_operand.vmem [shape: f32[8,8], index: 3, kind: output, shape index: {}]  }
   0x1   :  { %132 = vmatprep.subr.mxu0 %v169_v0  ;;  %v30_v1 = vld [vmem:[%s248_s1 + $0x78] sm:$0xff]  ;;  %v29_v2 = vld [vmem:[%s248_s1 + $0x70] sm:$0xff]  ;;  %164 = vmatprep.mubr.msk.f32.mxu0 %vm170_vm0, %v169_v0  ;;  %v28_v3 = vld [vmem:[%s248_s1 + $0x68] sm:$0xff] }
   0x2   :  { %133 = vmatpush3.msra.mxu0 %v30_v1  ;;  %v27_v4 = vld [vmem:[%s248_s1 + $0x60] sm:$0xff]  ;;  %v26_v5 = vld [vmem:[%s248_s1 + $0x58] sm:$0xff]  ;;  %v25_v6 = vld [vmem:[%s248_s1 + $0x50] sm:$0xff] }
   0x3   :  { %134 = vmatprep.subr.mxu0 %v169_v0  ;;  %v24_v7 = vld [vmem:[%s248_s1 + $0x48] sm:$0xff]  ;;  %v23_v8 = vld [vmem:[%s248_s1 + $0x40] sm:$0xff]  ;;  %v22_v9 = vld [vmem:[%s248_s1 + $0x38] sm:$0xff] }
   0x4   :  { %135 = vmatpush3.msra.mxu0 %v29_v2  ;;  %v21_v10 = vld [vmem:[%s248_s1 + $0x30] sm:$0xff]  ;;  %v20_v11 = vld [vmem:[%s248_s1 + $0x28] sm:$0xff]  ;;  %v19_v12 = vld [vmem:[%s248_s1 + $0x20] sm:$0xff] }
   0x5   :  { %136 = vmatprep.subr.mxu0 %v169_v0  ;;  %v18_v13 = vld [vmem:[%s248_s1 + $0x18] sm:$0xff]  ;;  %v17_v14 = vld [vmem:[%s248_s1 + $0x10] sm:$0xff]  ;;  %v16_v15 = vld [vmem:[%s248_s1 + $0x8] sm:$0xff] }
   0x6   :  { %137 = vmatpush3.msra.mxu0 %v28_v3  ;;  %v15_v16 = vld [vmem:[%s248_s1] sm:$0xff] }
   0x7   :  { %138 = vmatprep.subr.mxu0 %v169_v0  ;;  %v14_v17 = vld [vmem:[%s249_s0] sm:$0xff] }
   0x8   :  { %139 = vmatpush3.msra.mxu0 %v27_v4  ;;  %v114_v18 = vld [vmem:[%s250_s2] ss:$0 sm:$0xff] }
   0x9   :  { %140 = vmatprep.subr.mxu0 %v169_v0 }
   0xa   :  { %141 = vmatpush3.msra.mxu0 %v26_v5 }
   0xb   :  { %142 = vmatprep.subr.mxu0 %v169_v0 }
   0xc   :  { %143 = vmatpush3.msra.mxu0 %v25_v6 }
   0xd   :  { %144 = vmatprep.subr.mxu0 %v169_v0 }
   0xe   :  { %145 = vmatpush3.msra.mxu0 %v24_v7 }
   0xf   :  { %146 = vmatprep.subr.mxu0 %v169_v0 }
  0x10   :  { %147 = vmatpush3.msra.mxu0 %v23_v8 }
  0x11   :  { %148 = vmatprep.subr.mxu0 %v169_v0 }
  0x12   :  { %149 = vmatpush3.msra.mxu0 %v22_v9 }
  0x13   :  { %150 = vmatprep.subr.mxu0 %v169_v0 }
  0x14   :  { %151 = vmatpush3.msra.mxu0 %v21_v10 }
  0x15   :  { %152 = vmatprep.subr.mxu0 %v169_v0 }
  0x16   :  { %153 = vmatpush3.msra.mxu0 %v20_v11 }
  0x17   :  { %154 = vmatprep.subr.mxu0 %v169_v0 }
  0x18   :  { %155 = vmatpush3.msra.mxu0 %v19_v12 }
  0x19   :  { %156 = vmatprep.subr.mxu0 %v169_v0 }
  0x1a   :  { %157 = vmatpush3.msra.mxu0 %v18_v13 }
  0x1b   :  { %158 = vmatprep.subr.mxu0 %v169_v0 }
  0x1c   :  { %159 = vmatpush3.msra.mxu0 %v17_v14 }
  0x1d   :  { %160 = vmatprep.subr.mxu0 %v169_v0 }
  0x1e   :  { %161 = vmatpush3.msra.mxu0 %v16_v15 }
  0x1f   :  { %162 = vmatprep.subr.mxu0 %v169_v0 }
  0x20   :  { %163 = vmatpush3.msra.mxu0 %v15_v16 }
  0x21   :  { %165 = vmatmul.mubr.f32.vlgmr.msra.gmra.mxu0 %v14_v17 }
  0xe1   :  { %v104_v19 = vpop.f32.mrf.mxu0 }
  0xe2   :  { %v105_v20 = vadd.f32 %v114_v18, %v104_v19 }
  0xe3   :  { %v166_v21 = vpop.f32.mrf.mxu0 }
  0xe4   :  { %109 = vst.msk [vmem:[%s251_s3] sm:$0xff] %vm108_vm1, %v105_v20 }

// kernel: _lambda_.4
= control target key start
LH: loop header
LB: loop body
LE: loop exit
PB: predicated region body
PF: predicated region fallthrough
CT: control target
= control target key end

     0   :  { %vm24_vm0 = vcmask 130048   ;;  %vm122_vm1 = vcmask 261120   ;;  %s217_s1 = inlined_call_operand.vmem [shape: f32[16,32], index: 1, kind: input, shape index: {}]   ;;  %s218_s0 = inlined_call_operand.vmem [shape: f32[32,16], index: 0, kind: input, shape index: {}]   ;;  %s219_s2 = inlined_call_operand.vmem [shape: f32[32,32], index: 2, kind: input, shape index: {}]   ;;  %s220_s3 = inlined_call_operand.vmem [shape: f32[32,32], index: 3, kind: output, shape index: {}]  }
   0x1   :  { %v19_v0 = vld [vmem:[%s217_s1 + $0x8] sm:$0xff]  ;;  %v18_v1 = vld [vmem:[%s217_s1] sm:$0xff]  ;;  %v16_v3 = vld [vmem:[%s218_s0 + $0x10] sm:$0xff] }
   0x2   :  { %141 = vmatprep.subr.mxu0 %v19_v0  ;;  %151 = vmatprep.subr.mxu1 %v19_v0  ;;  %v14_v2 = vld [vmem:[%s218_s0] sm:$0xff]  ;;  %v15_v4 = vld [vmem:[%s218_s0 + $0x8] sm:$0xff]  ;;  %v17_v5 = vld [vmem:[%s218_s0 + $0x18] sm:$0xff] }
   0x3   :  { %142 = vmatpush3.msra.mxu0 %v19_v0  ;;  %153 = vmatpush3.msra.mxu1 %v19_v0  ;;  %v21_v6 = vld [vmem:[%s219_s2 + $0x8] sm:$0xff]  ;;  %v23_v7 = vld [vmem:[%s219_s2 + $0x18] sm:$0xff]  ;;  %v20_v10 = vld [vmem:[%s219_s2] sm:$0xff] }
   0x4   :  { %143 = vmatprep.subr.mxu0 %v18_v1  ;;  %152 = vmatprep.subr.mxu1 %v18_v1  ;;  %v22_v11 = vld [vmem:[%s219_s2 + $0x10] sm:$0xff] }
   0x5   :  { %144 = vmatpush3.msra.mxu0 %v18_v1  ;;  %154 = vmatpush3.msra.mxu1 %v18_v1 }
   0x6   :  { %145 = vmatprep.mubr.msk.f32.mxu0 %vm24_vm0, %v14_v2  ;;  %148 = vmatprep.mubr.msk.f32.mxu1 %vm24_vm0, %v16_v3 }
   0x7   :  { %146 = vmatmul.mubr.msk.f32.vlgmr.msra.gmra.mxu0 %vm24_vm0, %v15_v4  ;;  %149 = vmatmul.mubr.msk.f32.vlgmr.msra.gmra.mxu1 %vm24_vm0, %v17_v5 }
  0xc7   :  { %v147_v8 = vpop.f32.mrf.mxu0  ;;  %v150_v9 = vpop.f32.mrf.mxu1 }
  0xc8   :  { %v109_v12 = vadd.f32 %v147_v8, %v21_v6  ;;  %v119_v13 = vadd.f32 %v150_v9, %v23_v7 }
  0xc9   :  { %v103_v14 = vpop.f32.mrf.mxu0  ;;  %v113_v15 = vpop.f32.mrf.mxu1 }
  0xca   :  { %124 = vst.msk [vmem:[%s220_s3 + $0x8] sm:$0xff] %vm122_vm1, %v109_v12  ;;  %126 = vst.msk [vmem:[%s220_s3 + $0x18] sm:$0xff] %vm122_vm1, %v119_v13  ;;  %v104_v16 = vadd.f32 %v103_v14, %v20_v10  ;;  %v114_v17 = vadd.f32 %v113_v15, %v22_v11 }
  0xcc   :  { %123 = vst.msk [vmem:[%s220_s3] sm:$0xff] %vm122_vm1, %v104_v16  ;;  %125 = vst.msk [vmem:[%s220_s3 + $0x10] sm:$0xff] %vm122_vm1, %v114_v17 }

// kernel: _lambda_.5
= control target key start
LH: loop header
LB: loop body
LE: loop exit
PB: predicated region body
PF: predicated region fallthrough
CT: control target
= control target key end

     0   :  { %s4964_s18 = smov 0   ;;  %s5550_s0 = inlined_call_operand.vmem [shape: f32[32,32], index: 0, kind: input, shape index: {}]   ;;  %s5551_s1 = inlined_call_operand.vmem [shape: f32[3,32,32], index: 1, kind: input, shape index: {}]   ;;  %s5552_s2 = inlined_call_operand.vmem [shape: f32[3,1,32], index: 2, kind: input, shape index: {}]   ;;  %s5553_s3 = inlined_call_operand.vmem [shape: f32[12,32,8], index: 3, kind: input, shape index: {}]   ;;  %s5554_s4 = inlined_call_operand.vmem [shape: f32[12,1,8], index: 4, kind: input, shape index: {}]   ;;  %s5555_s5 = inlined_call_operand.vmem [shape: f32[32,32], index: 5, kind: input, shape index: {}]   ;;  %s5556_s6 = inlined_call_operand.vmem [shape: f32[4,8,32], index: 6, kind: input, shape index: {}]   ;;  %s5557_s7 = inlined_call_operand.vmem [shape: f32[1,32], index: 7, kind: input, shape index: {}]   ;;  %s5558_s8 = inlined_call_operand.vmem [shape: f32[32,64], index: 8, kind: input, shape index: {}]   ;;  %s5559_s9 = inlined_call_operand.vmem [shape: f32[64,32], index: 9, kind: input, shape index: {}]   ;;  %s5560_s10 = inlined_call_operand.vmem [shape: f32[4,16,16], index: 10, kind: input, shape index: {}]   ;;  %s5561_s11 = inlined_call_operand.vmem [shape: f32[4,16,16], index: 11, kind: input, shape index: {}]   ;;  %s5562_s12 = inlined_call_operand.vmem [shape: f32[16,16], index: 12, kind: input, shape index: {}]   ;;  %s5563_s13 = inlined_call_operand.vmem [shape: f32[16,16], index: 13, kind: input, shape index: {}]   ;;  %s5564_s14 = inlined_call_operand.vmem [shape: f32[16,16], index: 14, kind: input, shape index: {}]   ;;  %s5565_s15 = inlined_call_operand.vmem [shape: f32[32,32], index: 15, kind: output, shape index: {}]  }
   0x1 LB: > { %s4091_s19 = sadd.s32 4294967295, %s4881_s18   ;;  %p4095_p0 = scmp.ge.s32.totalorder %s4881_s18, 1  ;;  %s4881_s18 = sphi %s4964_s18, %s25_s18  }
   0x2   : > { %p438_p1 = scmp.lt.s32.totalorder %s4881_s18, 3 }
   0x4   : > { %p439_p2 = pnand %p4095_p0, %p438_p1 }
   0x5   : > { %s4096_s26 = sshll.u32 (!%p439_p2), %s4091_s19, 1 }
   0x6   : > { %442 = sbr.rel (%p439_p2) target bundleno = 5635 (0x1603), region = 80  ;;  %p487_p3 = scmp.lt.s32.totalorder (!%p439_p2), %s4096_s26, 3 }
   0xb   : > { %v4106_v0 = vld [vmem:[%s5551_s1 + $0x38] sm:$0xff]  ;;  %v4105_v1 = vld [vmem:[%s5551_s1 + $0x30] sm:$0xff]  ;;  %v4104_v4 = vld [vmem:[%s5551_s1 + $0x28] sm:$0xff]  ;;  %s5567_s26 = smov (!%p487_p3, %s4096_s26), 3  ;;  %vm511_vm0 = vcmask 261120   ;;  %vm862_vm1 = vcmask 130048  }
   0xc   : > { %v503_v2 = vld [vmem:[%s5551_s1 + $0x18] sm:$0xff]  ;;  %4483 = vmatprep.subr.mxu1 %v4106_v0  ;;  %v502_v3 = vld [vmem:[%s5551_s1 + $0x10] sm:$0xff]  ;;  %v501_v5 = vld [vmem:[%s5551_s1 + $0x8] sm:$0xff]  ;;  %s4097_s23 = sshll.u32 %s5567_s26, 3  ;;  %vm1698_vm10 = vcmask 64512   ;;  %vm3874_vm11 = vcmask 523264  }
   0xd   : > { %4472 = vmatprep.subr.mxu0 %v503_v2  ;;  %4484 = vmatpush3.msra.mxu1 %v4106_v0  ;;  %v4103_v6 = vld [vmem:[%s5551_s1 + $0x20] sm:$0xff]  ;;  %s5004_s27 = scalar_lea.vmem %s5550_s0, %s4097_s23  ;;  %v4114_v20 = vld [vmem:[%s5551_s1 + $0x58] sm:$0xff]  ;;  %v4113_v21 = vld [vmem:[%s5551_s1 + $0x50] sm:$0xff]  ;;  %s496_s20 = scalar_lea.vmem %s5565_s15, %s4097_s23 }
   0xe   : > { %4473 = vmatpush3.msra.mxu0 %v503_v2  ;;  %4485 = vmatprep.subr.mxu1 %v4105_v1  ;;  %v500_v7 = vld [vmem:[%s5551_s1] sm:$0xff]  ;;  %v5010_v9 = vld [vmem:[%s5004_s27 + $0x8] sm:$0xff]  ;;  %v4126_v24 = vld [vmem:[%s5560_s10 + $0x18] sm:$0xff] }
   0xf   : > { %4474 = vmatprep.subr.mxu0 %v502_v3  ;;  %4486 = vmatpush3.msra.mxu1 %v4105_v1  ;;  %v5007_v8 = vld [vmem:[%s5004_s27] sm:$0xff]  ;;  %v4112_v22 = vld [vmem:[%s5551_s1 + $0x48] sm:$0xff]  ;;  %v4125_v28 = vld [vmem:[%s5560_s10 + $0x10] sm:$0xff]  ;;  %v4883_v1 = vmov 0  }
  0x10   : > { %4475 = vmatpush3.msra.mxu0 %v502_v3  ;;  %4487 = vmatprep.subr.mxu1 %v4104_v4  ;;  %v4108_v10 = vld [vmem:[%s5552_s2 + $0x1] ss:$0 sm:$0xff]  ;;  %v4100_v15 = vld [vmem:[%s5552_s2] ss:$0 sm:$0xff]  ;;  %v859_v25 = vld [vmem:[%s5560_s10 + $0x8] sm:$0xff] }
  0x11   : > { %4476 = vmatprep.subr.mxu0 %v501_v5  ;;  %4488 = vmatpush3.msra.mxu1 %v4104_v4  ;;  %v4111_v23 = vld [vmem:[%s5551_s1 + $0x40] sm:$0xff]  ;;  %v4130_v27 = vld [vmem:[%s5560_s10 + $0x28] sm:$0xff]  ;;  %v4133_v42 = vld [vmem:[%s5560_s10 + $0x30] sm:$0xff] }
  0x12   : > { %4477 = vmatpush3.msra.mxu0 %v501_v5  ;;  %4489 = vmatprep.subr.mxu1 %v4103_v6  ;;  %v4129_v36 = vld [vmem:[%s5560_s10 + $0x20] sm:$0xff]  ;;  %v4134_v43 = vld [vmem:[%s5560_s10 + $0x38] sm:$0xff]  ;;  %v857_v55 = vld [vmem:[%s5562_s12 + $0x8] sm:$0xff] }
  0x13   : > { %4478 = vmatprep.subr.mxu0 %v500_v7  ;;  %4490 = vmatpush3.msra.mxu1 %v4103_v6  ;;  %v858_v37 = vld [vmem:[%s5560_s10] sm:$0xff] }
  0x14   : > { %4491 = vmatprep.mubr.msk.f32.mxu1 %vm511_vm0, %v5007_v8  ;;  %4479 = vmatpush3.msra.mxu0 %v500_v7  ;;  %v856_v50 = vld [vmem:[%s5562_s12] sm:$0xff] }
  0x15   : > { %4492 = vmatmul.mubr.msk.f32.vlgmr.msra.gmra.mxu1 %vm511_vm0, %v5010_v9  ;;  %4480 = vmatprep.mubr.msk.f32.mxu0 %vm511_vm0, %v5007_v8  ;;  %v4116_v59 = vld [vmem:[%s5552_s2 + $0x2] ss:$0 sm:$0xff] }
  0x16   : > { %4481 = vmatmul.mubr.msk.f32.vlgmr.msra.gmra.mxu0 %vm511_vm0, %v5010_v9  ;;  %4494 = vmatprep.subr.mxu0 %v4114_v20 }
  0x17   : > { %4502 = vmatprep.mubr.msk.f32.mxu0 %vm511_vm0, %v5007_v8  ;;  %4495 = vmatpush3.msra.mxu0 %v4114_v20 }
  0x18   : > { %4496 = vmatprep.subr.mxu0 %v4113_v21  ;;  %4820 = vset.pattern.permute.xlu1 %v4883_v1 }
  0x19   : > { %4497 = vmatpush3.msra.mxu0 %v4113_v21  ;;  %4819 = vset.pattern.permute.xlu0 %v4883_v1 }
  0x1a   : > { %4498 = vmatprep.subr.mxu0 %v4112_v22 }
  0x1b   : > { %4499 = vmatpush3.msra.mxu0 %v4112_v22 }
  0x1c   : > { %4500 = vmatprep.subr.mxu0 %v4111_v23 }
  0x1d   : > { %4501 = vmatpush3.msra.mxu0 %v4111_v23 }
  0x1e   : > { %4503 = vmatmul.mubr.msk.f32.vlgmr.msra.gmra.mxu0 %vm511_vm0, %v5010_v9 }
  0x1f   : > { %4516 = vmatprep.mubr.msk.f32.mxu0 %vm862_vm1, %v856_v50 }
  0xd5   : > { %v4493_v11 = vpop.f32.mrf.mxu1 }
  0xd6   : > { %v678_v12 = vadd.f32 %v4493_v11, %v4108_v10  ;;  %v4482_v14 = vpop.f32.mrf.mxu0 }
  0xd7   : > { %v672_v13 = vpop.f32.mrf.mxu1  ;;  %v590_v19 = vadd.f32 %v4482_v14, %v4100_v15 }
  0xd8   : > { %v673_v16 = vadd.f32 %v4108_v10, %v672_v13  ;;  %4505 = vmatprep.subr.msk.mxu1 %vm511_vm0, %v678_v12  ;;  %v584_v17 = vpop.f32.mrf.mxu0 }
  0xd9   : > { %4506 = vmatpush3.xpose.msk.msra.mxu1 %vm511_vm0, %v678_v12  ;;  %v585_v18 = vadd.f32 %v4100_v15, %v584_v17 }
  0xda   : > { %4507 = vmatprep.subr.msk.mxu1 %vm511_vm0, %v673_v16 }
  0xdb   : > { %4509 = vmatprep.mubr.msk.f32.mxu1 %vm511_vm0, %v585_v18 }
  0xdd   : > { %4508 = vmatpush3.xpose.msk.msra.mxu1 %vm511_vm0, %v673_v16 }
  0xde   : > { %v4504_v56 = vpop.f32.mrf.mxu0 }
  0xdf   : > { %v766_v62 = vadd.f32 %v4504_v56, %v4116_v59 }
  0xe0   : > { %4510 = vmatmul.mubr.msk.f32.vlgmr.msra.gmra.mxu1 %vm511_vm0, %v590_v19  ;;  %v760_v60 = vpop.f32.mrf.mxu0 }
  0xe1   : > { %4523 = vmatprep.mubr.msk.f32.mxu1 %vm862_vm1, %v856_v50  ;;  %v761_v0 = vadd.f32 %v4116_v59, %v760_v60 }
 0x1a0   : > { %v4511_v26 = vpop.f32.mrf.mxu1 }
 0x1a1   : > { %v956_v29 = vmul.f32 %v4511_v26, %v4126_v24  ;;  %v861_v30 = vmul.f32 %v4511_v26, %v859_v25  ;;  %v1044_v34 = vmul.f32 %v4511_v26, %v4130_v27  ;;  %v1132_v47 = vmul.f32 %v4511_v26, %v4134_v43 }
 0x1a2   : > { %v847_v31 = vpop.f32.mrf.mxu1 }
 0x1a3   : > { %v960_v32 = vsel %vm862_vm1, %v956_v29, 0.0  ;;  %v866_v33 = vsel %vm862_vm1, %v861_v30, 0.0  ;;  %v955_v35 = vmul.f32 %v4125_v28, %v847_v31  ;;  %v1048_v38 = vsel %vm862_vm1, %v1044_v34, 0.0 }
 0x1a4   : > { %961 = vadd.xlane.f32.xlu1 %v960_v32  ;;  %867 = vadd.xlane.f32.xlu0 %v866_v33  ;;  %v1043_v40 = vmul.f32 %v4129_v36, %v847_v31  ;;  %v860_v41 = vmul.f32 %v858_v37, %v847_v31  ;;  %v1131_v46 = vmul.f32 %v4133_v42, %v847_v31  ;;  %v1136_v49 = vsel %vm862_vm1, %v1132_v47, 0.0 }
 0x1a5   : > { %v957_v39 = vsel %vm862_vm1, %v955_v35, 0.0 }
 0x1a6   : > { %v1045_v44 = vsel %vm862_vm1, %v1043_v40, 0.0  ;;  %v863_v45 = vsel %vm862_vm1, %v860_v41, 0.0  ;;  %v1133_v48 = vsel %vm862_vm1, %v1131_v46, 0.0 }
 0x1a8   : > { %1049 = vadd.xlane.f32.xlu0 %v1048_v38  ;;  %958 = vadd.xlane.f32.xlu1 %v957_v39 }
 0x1ac   : > { %1046 = vadd.xlane.f32.xlu1 %v1045_v44  ;;  %864 = vadd.xlane.f32.xlu0 %v863_v45 }
 0x1b0   : > { %1134 = vadd.xlane.f32.xlu1 %v1133_v48  ;;  %1137 = vadd.xlane.f32.xlu0 %v1136_v49 }
 0x22d   : > { %v962_v51 = vpop.xlane.xlu1 %961  ;;  %v868_v52 = vpop.xlane.xlu0 %867 }
 0x22e   : > { %4512 = vmatprep.subr.mxu0 %v868_v52  ;;  %4519 = vmatprep.subr.mxu1 %v962_v51 }
 0x22f   : > { %4513 = vmatpush3.msra.mxu0 %v868_v52  ;;  %4520 = vmatpush3.msra.mxu1 %v962_v51 }
 0x231   : > { %v1050_v53 = vpop.xlane.xlu0 %1049  ;;  %v959_v54 = vpop.xlane.xlu1 %958 }
 0x232   : > { %4521 = vmatprep.subr.mxu1 %v959_v54 }
 0x233   : > { %4522 = vmatpush3.msra.mxu1 %v959_v54 }
 0x234   : > { %4524 = vmatmul.mubr.msk.f32.vlgmr.msra.gmra.mxu1 %vm862_vm1, %v857_v55 }
 0x235   : > { %v1047_v57 = vpop.xlane.xlu1 %1046  ;;  %v865_v58 = vpop.xlane.xlu0 %864  ;;  %4537 = vmatprep.mubr.msk.f32.mxu1 %vm862_vm1, %v856_v50 }
 0x236   : > { %4514 = vmatprep.subr.mxu0 %v865_v58 }
 0x237   : > { %4515 = vmatpush3.msra.mxu0 %v865_v58 }
 0x238   : > { %4517 = vmatmul.mubr.msk.f32.vlgmr.msra.gmra.mxu0 %vm862_vm1, %v857_v55  ;;  %4526 = vmatprep.subr.mxu0 %v1050_v53 }
 0x239   : > { %4527 = vmatpush3.msra.mxu0 %v1050_v53  ;;  %v1138_v61 = vpop.xlane.xlu0 %1137  ;;  %4530 = vmatprep.mubr.msk.f32.mxu0 %vm862_vm1, %v856_v50  ;;  %v1135_v63 = vpop.xlane.xlu1 %1134 }
 0x23a   : > { %4528 = vmatprep.subr.mxu0 %v1047_v57  ;;  %4533 = vmatprep.subr.mxu1 %v1138_v61 }
 0x23b   : > { %4529 = vmatpush3.msra.mxu0 %v1047_v57  ;;  %4534 = vmatpush3.msra.mxu1 %v1138_v61 }
 0x23c   : > { %4531 = vmatmul.mubr.msk.f32.vlgmr.msra.gmra.mxu0 %vm862_vm1, %v857_v55  ;;  %4535 = vmatprep.subr.mxu1 %v1135_v63 }
 0x23d   : > { %4536 = vmatpush3.msra.mxu1 %v1135_v63  ;;  %4540 = vmatprep.subr.mxu0 %v766_v62 }
 0x23e   : > { %4538 = vmatmul.mubr.msk.f32.vlgmr.msra.gmra.mxu1 %vm862_vm1, %v857_v55  ;;  %4541 = vmatpush3.msra.mxu0 %v766_v62 }
 0x23f   : > { %4542 = vmatprep.subr.mxu0 %v761_v0  ;;  %4555 = vmatprep.mubr.msk.f32.mxu1 %vm511_vm0, %v5007_v8 }
 0x240   : > { %4543 = vmatpush3.msra.mxu0 %v761_v0 }
 0x2f4   : > { %v4525_v2 = vpop.f32.mrf.mxu1 }
 0x2f5   : > { %v1039_v6 = vmul.f32 0.03125, %v4525_v2 }
 0x2f6   : > { %v1029_v4 = vpop.f32.mrf.mxu1 }
 0x2f7   : > { %v1038_v11 = vmul.f32 0.03125, %v1029_v4 }
 0x2f8   : > { %v4518_v3 = vpop.f32.mrf.mxu0 }
 0x2f9   : > { %v951_v5 = vmul.f32 0.03125, %v4518_v3 }
 0x2fa   : > { %v941_v7 = vpop.f32.mrf.mxu0 }
 0x2fb   : > { %v950_v10 = vmul.f32 0.03125, %v941_v7  ;;  %v1217_v13 = vmax.f32 %v951_v5, %v1039_v6 }
 0x2fc   : > { %v4532_v12 = vpop.f32.mrf.mxu0 }
 0x2fd   : > { %v1127_v14 = vmul.f32 0.03125, %v4532_v12  ;;  %v1216_v17 = vmax.f32 %v950_v10, %v1038_v11 }
 0x2fe   : > { %v1117_v15 = vpop.f32.mrf.mxu0  ;;  %v4539_v16 = vpop.f32.mrf.mxu1 }
 0x2ff   : > { %v1219_v18 = vmax.f32 %v1217_v13, %v1127_v14  ;;  %v1126_v19 = vmul.f32 0.03125, %v1117_v15  ;;  %v1215_v20 = vmul.f32 0.03125, %v4539_v16 }
 0x300   : > { %v1205_v21 = vpop.f32.mrf.mxu1 }
 0x301   : > { %v1218_v22 = vmax.f32 %v1216_v17, %v1126_v19  ;;  %v1221_v23 = vmax.f32 %v1219_v18, %v1215_v20  ;;  %v1214_v24 = vmul.f32 0.03125, %v1205_v21  ;;  %v4151_v18 = vld [vmem:[%s5553_s3 + $0x98] sm:$0xff]  ;;  %v1437_v21 = vld [vmem:[%s5553_s3 + $0x8] sm:$0xff] }
 0x302   : > { %4558 = vmatprep.subr.mxu0 %v4151_v18 }
 0x303   : > { %vm1223_vm2 = vcmp.ge.f32.partialorder %v951_v5, %v1221_v23  ;;  %vm1227_vm3 = vcmp.ge.f32.partialorder %v1039_v6, %v1221_v23  ;;  %vm1231_vm4 = vcmp.ge.f32.partialorder %v1127_v14, %v1221_v23  ;;  %v1220_v27 = vmax.f32 %v1218_v22, %v1214_v24  ;;  %v1436_v22 = vld [vmem:[%s5553_s3] sm:$0xff] }
 0x304   : > { %v1225_v25 = vsel %vm1223_vm2, %v951_v5, -1e+30  ;;  %v1229_v26 = vsel %vm1227_vm3, %v1039_v6, -1e+30  ;;  %vm1235_vm5 = vcmp.ge.f32.partialorder %v1215_v20, %v1221_v23  ;;  %v1233_v29 = vsel %vm1231_vm4, %v1127_v14, -1e+30 }
 0x305   : > { %v1239_v28 = vmax.f32 %v1225_v25, %v1229_v26  ;;  %vm1222_vm6 = vcmp.ge.f32.partialorder %v950_v10, %v1220_v27  ;;  %vm1226_vm7 = vcmp.ge.f32.partialorder %v1038_v11, %v1220_v27  ;;  %vm1230_vm8 = vcmp.ge.f32.partialorder %v1126_v19, %v1220_v27 }
 0x306   : > { %v1224_v31 = vsel %vm1222_vm6, %v950_v10, -1e+30  ;;  %v1228_v32 = vsel %vm1226_vm7, %v1038_v11, -1e+30  ;;  %vm1234_vm9 = vcmp.ge.f32.partialorder %v1214_v24, %v1220_v27  ;;  %v1237_v33 = vsel %vm1235_vm5, %v1215_v20, -1e+30 }
 0x307   : > { %v1241_v30 = vmax.f32 %v1239_v28, %v1233_v29  ;;  %v1238_v34 = vmax.f32 %v1224_v31, %v1228_v32  ;;  %v1232_v36 = vsel %vm1230_vm8, %v1126_v19, -1e+30  ;;  %v1236_v37 = vsel %vm1234_vm9, %v1214_v24, -1e+30  ;;  %v1439_v19 = vld [vmem:[%s5553_s3 + $0x18] sm:$0xff]  ;;  %v1438_v20 = vld [vmem:[%s5553_s3 + $0x10] sm:$0xff] }
 0x308   : > { %4547 = vmatprep.subr.mxu1 %v1439_v19  ;;  %v1284_v28 = vld [vmem:[%s5561_s11] sm:$0xff] }
 0x309   : > { %v1243_v35 = vmax.f32 %v1241_v30, %v1237_v33  ;;  %v1240_v38 = vmax.f32 %v1238_v34, %v1232_v36  ;;  %4548 = vmatpush3.msra.mxu1 %v1439_v19  ;;  %v4139_v30 = vld [vmem:[%s5561_s11 + $0x20] sm:$0xff] }
 0x30a   : > { %4549 = vmatprep.subr.mxu1 %v1438_v20 }
 0x30b   : > { %v1245_v39 = vsub.f32 %v1225_v25, %v1243_v35  ;;  %v1251_v40 = vsub.f32 %v1229_v26, %v1243_v35  ;;  %v1257_v41 = vsub.f32 %v1233_v29, %v1243_v35  ;;  %v1263_v42 = vsub.f32 %v1237_v33, %v1243_v35  ;;  %4550 = vmatpush3.msra.mxu1 %v1438_v20  ;;  %v4137_v26 = vld [vmem:[%s5561_s11 + $0x10] sm:$0xff] }
 0x30c   : > { %v1242_v43 = vmax.f32 %v1240_v38, %v1236_v37  ;;  %4551 = vmatprep.subr.mxu1 %v1437_v21  ;;  %v4141_v38 = vld [vmem:[%s5561_s11 + $0x30] sm:$0xff] }
 0x30d   : > { %v1248_v44 = vmul.f32 1.442695, %v1245_v39  ;;  %v1254_v45 = vmul.f32 1.442695, %v1251_v40  ;;  %v1260_v46 = vmul.f32 1.442695, %v1257_v41  ;;  %4552 = vmatpush3.msra.mxu1 %v1437_v21 }
 0x30e   : > { %v1266_v47 = vmul.f32 1.442695, %v1263_v42  ;;  %v1244_v48 = vsub.f32 %v1224_v31, %v1242_v43  ;;  %v1250_v49 = vsub.f32 %v1228_v32, %v1242_v43  ;;  %v1256_v50 = vsub.f32 %v1232_v36, %v1242_v43  ;;  %4553 = vmatprep.subr.mxu1 %v1436_v22  ;;  %v4138_v32 = vld [vmem:[%s5561_s11 + $0x18] sm:$0xff]  ;;  %v1285_v36 = vld [vmem:[%s5561_s11 + $0x8] sm:$0xff] }
 0x30f   : > { %4821 = vpow2.f32 %v1248_v44  ;;  %v1262_v53 = vsub.f32 %v1236_v37, %v1242_v43  ;;  %4554 = vmatpush3.msra.mxu1 %v1436_v22  ;;  %v4140_v37 = vld [vmem:[%s5561_s11 + $0x28] sm:$0xff] }
 0x310   : > { %4823 = vpow2.f32 %v1254_v45  ;;  %v1246_v51 = vmul.f32 1.442695, %v1244_v48  ;;  %v1252_v52 = vmul.f32 1.442695, %v1250_v49  ;;  %v1258_v54 = vmul.f32 1.442695, %v1256_v50  ;;  %4556 = vmatmul.mubr.msk.f32.vlgmr.msra.gmra.mxu1 %vm511_vm0, %v5010_v9 }
 0x311   : > { %4825 = vpow2.f32 %v1260_v46  ;;  %v1264_v55 = vmul.f32 1.442695, %v1262_v53  ;;  %4577 = vmatprep.mubr.msk.f32.mxu1 %vm511_vm0, %v5007_v8  ;;  %v4142_v46 = vld [vmem:[%s5561_s11 + $0x38] sm:$0xff]  ;;  %v4150_v53 = vld [vmem:[%s5553_s3 + $0x90] sm:$0xff] }
 0x312   : > { %4827 = vpow2.f32 %v1266_v47 }
 0x313   : > { %4829 = vpow2.f32 %v1246_v51 }
 0x314   : > { %4831 = vpow2.f32 %v1252_v52 }
 0x315   : > { %4833 = vpow2.f32 %v1258_v54  ;;  %v4149_v54 = vld [vmem:[%s5553_s3 + $0x88] sm:$0xff] }
 0x316   : > { %4835 = vpow2.f32 %v1264_v55  ;;  %v4148_v55 = vld [vmem:[%s5553_s3 + $0x80] sm:$0xff] }
 0x31c   : > { %v4822_v56 = vpop.eup %4821 }
 0x31d   : > { %v4824_v57 = vpop.eup %4823 }
 0x31e   : > { %v4826_v58 = vpop.eup %4825  ;;  %v1269_v59 = vadd.f32 %v4824_v57, %v4822_v56 }
 0x31f   : > { %v4828_v60 = vpop.eup %4827 }
 0x320   : > { %v4830_v61 = vpop.eup %4829  ;;  %v1271_v62 = vadd.f32 %v4826_v58, %v1269_v59 }
 0x321   : > { %v4832_v63 = vpop.eup %4831 }
 0x322   : > { %v1273_v0 = vadd.f32 %v4828_v60, %v1271_v62  ;;  %v1268_v1 = vadd.f32 %v4832_v63, %v4830_v61  ;;  %v4834_v2 = vpop.eup %4833 }
 0x323   : > { %v4836_v4 = vpop.eup %4835 }
 0x324   : > { %4837 = vrcp.f32 %v1273_v0  ;;  %v1270_v3 = vadd.f32 %v4834_v2, %v1268_v1 }
 0x326   : > { %v1272_v5 = vadd.f32 %v4836_v4, %v1270_v3 }
 0x328   : > { %4839 = vrcp.f32 %v1272_v5  ;;  %v4158_v5 = vld [vmem:[%s5553_s3 + $0x110] sm:$0xff] }
 0x331   : > { %v4838_v6 = vpop.eup %4837 }
 0x332   : > { %v1277_v7 = vmul.f32 %v4838_v6, %v4822_v56  ;;  %v1279_v12 = vmul.f32 %v4838_v6, %v4824_v57  ;;  %v1281_v13 = vmul.f32 %v4838_v6, %v4826_v58  ;;  %v1283_v17 = vmul.f32 %v4838_v6, %v4828_v60  ;;  %v4145_v57 = vld [vmem:[%s5554_s4] ss:$0 sm:$0xff]  ;;  %v4157_v6 = vld [vmem:[%s5553_s3 + $0x108] sm:$0xff] }
 0x334   : > { %1293 = vperm.xlu1 %4820, %v1277_v7   ;;  %v4156_v7 = vld [vmem:[%s5553_s3 + $0x100] sm:$0xff] }
 0x335   : > { %v4840_v10 = vpop.eup %4839 }
 0x336   : > { %v1275_v11 = vmul.f32 %v4840_v10, %v4830_v61  ;;  %v1278_v14 = vmul.f32 %v4840_v10, %v4832_v63  ;;  %v1280_v15 = vmul.f32 %v4840_v10, %v4834_v2  ;;  %v1282_v16 = vmul.f32 %v4840_v10, %v4836_v4  ;;  %v4153_v63 = vld [vmem:[%s5554_s4 + $0x4] ss:$0 sm:$0xff]  ;;  %v4159_v4 = vld [vmem:[%s5553_s3 + $0x118] sm:$0xff] }
 0x337   : > { %4569 = vmatprep.subr.mxu1 %v4159_v4 }
 0x338   : > { %1288 = vperm.xlu0 %4819, %v1275_v11   ;;  %1308 = vperm.xlu1 %4820, %v1279_v12   ;;  %v5190_v11 = vld [vmem:[%s5564_s14 + $0x8] sm:$0xff] }
 0x339   : > { %4570 = vmatpush3.msra.mxu1 %v4159_v4 }
 0x33a   : > { %4571 = vmatprep.subr.mxu1 %v4158_v5 }
 0x33b   : > { %4572 = vmatpush3.msra.mxu1 %v4158_v5 }
 0x33c   : > { %1325 = vperm.xlu1 %4820, %v1281_v13   ;;  %4573 = vmatprep.subr.mxu1 %v4157_v6 }
 0x33d   : > { %4574 = vmatpush3.msra.mxu1 %v4157_v6  ;;  %v4193_v6 = vld [vmem:[%s5553_s3 + $0x138] sm:$0xff] }
 0x33e   : > { %4575 = vmatprep.subr.mxu1 %v4156_v7 }
 0x33f   : > { %4576 = vmatpush3.msra.mxu1 %v4156_v7  ;;  %v4192_v7 = vld [vmem:[%s5553_s3 + $0x130] sm:$0xff] }
 0x340   : > { %1303 = vperm.xlu1 %4820, %v1278_v14   ;;  %4578 = vmatmul.mubr.msk.f32.vlgmr.msra.gmra.mxu1 %vm511_vm0, %v5010_v9  ;;  %v5195_v14 = vld [vmem:[%s5564_s14] sm:$0xff] }
 0x344   : > { %1320 = vperm.xlu1 %4820, %v1280_v15  }
 0x348   : > { %1337 = vperm.xlu1 %4820, %v1282_v16  }
 0x34c   : > { %1342 = vperm.xlu1 %4820, %v1283_v17  }
 0x3af   : > { %v1294_v23 = vpop.permute.xlu1 %1293 }
 0x3b0   : > { %v1297_v42 = vmul.f32 %v1294_v23, %v1285_v36 }
 0x3b3   : > { %v1309_v24 = vpop.permute.xlu1 %1308  ;;  %v1289_v29 = vpop.permute.xlu0 %1288 }
 0x3b4   : > { %v1296_v34 = vmul.f32 %v1289_v29, %v1284_v28  ;;  %v1312_v39 = vmul.f32 %v4138_v32, %v1309_v24 }
 0x3b6   : > { %v1314_v47 = vadd.f32 %v1312_v39, %v1297_v42  ;;  %v1432_v42 = vld [vmem:[%s5555_s5 + $0x10] sm:$0xff] }
 0x3b7   : > { %v1326_v25 = vpop.permute.xlu1 %1325 }
 0x3b8   : > { %v1329_v43 = vmul.f32 %v4140_v37, %v1326_v25 }
 0x3ba   : > { %v1331_v50 = vadd.f32 %v1329_v43, %v1314_v47  ;;  %v1431_v43 = vld [vmem:[%s5555_s5 + $0x8] sm:$0xff] }
 0x3bb   : > { %v1304_v27 = vpop.permute.xlu1 %1303  ;;  %v4183_v47 = vld [vmem:[%s5553_s3 + $0xa8] sm:$0xff] }
 0x3bc   : > { %v1311_v31 = vmul.f32 %v4137_v26, %v1304_v27 }
 0x3be   : > { %v1313_v40 = vadd.f32 %v1311_v31, %v1296_v34  ;;  %v4161_v31 = vld [vmem:[%s5554_s4 + $0x8] ss:$0 sm:$0xff] }
 0x3bf   : > { %v1321_v33 = vpop.permute.xlu1 %1320 }
 0x3c0   : > { %v1328_v35 = vmul.f32 %v4139_v30, %v1321_v33 }
 0x3c2   : > { %v1330_v44 = vadd.f32 %v1328_v35, %v1313_v40  ;;  %v1433_v35 = vld [vmem:[%s5555_s5 + $0x18] sm:$0xff] }
 0x3c3   : > { %v1338_v41 = vpop.permute.xlu1 %1337 }
 0x3c4   : > { %v1345_v45 = vmul.f32 %v4141_v38, %v1338_v41 }
 0x3c6   : > { %v1347_v48 = vadd.f32 %v1345_v45, %v1330_v44  ;;  %v1430_v44 = vld [vmem:[%s5555_s5] sm:$0xff]  ;;  %v4185_v45 = vld [vmem:[%s5553_s3 + $0xb8] sm:$0xff] }
 0x3c7   : > { %v1343_v49 = vpop.permute.xlu1 %1342 }
 0x3c8   : > { %v1346_v51 = vmul.f32 %v4142_v46, %v1343_v49  ;;  %4544 = vmatprep.mubr.msk.f32.mxu0 %vm862_vm1, %v1347_v48  ;;  %v4184_v46 = vld [vmem:[%s5553_s3 + $0xb0] sm:$0xff]  ;;  %v4182_v48 = vld [vmem:[%s5553_s3 + $0xa0] sm:$0xff] }
 0x3c9   : > { %v1893_v49 = vld [vmem:[%s5556_s6] sm:$0xff] }
 0x3ca   : > { %v1348_v52 = vadd.f32 %v1346_v51, %v1331_v50  ;;  %v4177_v50 = vld [vmem:[%s5553_s3 + $0x38] sm:$0xff] }
 0x3cc   : > { %4545 = vmatmul.mubr.msk.f32.vlgmr.msra.gmra.mxu0 %vm862_vm1, %v1348_v52 }
 0x3cd   : > { %4559 = vmatpush3.msra.mxu0 %v4151_v18  ;;  %4566 = vmatprep.mubr.msk.f32.mxu0 %vm511_vm0, %v5007_v8 }
 0x3ce   : > { %4560 = vmatprep.subr.mxu0 %v4150_v53 }
 0x3cf   : > { %4561 = vmatpush3.msra.mxu0 %v4150_v53  ;;  %v4176_v53 = vld [vmem:[%s5553_s3 + $0x30] sm:$0xff] }
 0x3d0   : > { %4562 = vmatprep.subr.mxu0 %v4149_v54  ;;  %v4557_v56 = vpop.f32.mrf.mxu1 }
 0x3d1   : > { %4563 = vmatpush3.msra.mxu0 %v4149_v54  ;;  %v1519_v58 = vadd.f32 %v4557_v56, %v4145_v57  ;;  %v4175_v54 = vld [vmem:[%s5553_s3 + $0x28] sm:$0xff] }
 0x3d2   : > { %4564 = vmatprep.subr.mxu0 %v4148_v55  ;;  %v1513_v59 = vpop.f32.mrf.mxu1 }
 0x3d3   : > { %4565 = vmatpush3.msra.mxu0 %v4148_v55  ;;  %v1514_v60 = vadd.f32 %v4145_v57, %v1513_v59  ;;  %v4174_v55 = vld [vmem:[%s5553_s3 + $0x20] sm:$0xff] }
 0x3d4   : > { %4567 = vmatmul.mubr.msk.f32.vlgmr.msra.gmra.mxu0 %vm511_vm0, %v5010_v9 }
 0x3d5   : > { %4584 = vmatprep.mubr.msk.f32.mxu0 %vm1698_vm10, %v1514_v60 }
 0x400   : > { %v4579_v30 = vpop.f32.mrf.mxu1 }
 0x401   : > { %v1695_v32 = vadd.f32 %v4579_v30, %v4161_v31 }
 0x402   : > { %v1689_v33 = vpop.f32.mrf.mxu1 }
 0x403   : > { %v1690_v34 = vadd.f32 %v4161_v31, %v1689_v33  ;;  %4587 = vmatprep.subr.mxu1 %v1695_v32  ;;  %v4195_v33 = vld [vmem:[%s5554_s4 + $0x9] ss:$0 sm:$0xff] }
 0x404   : > { %4588 = vmatpush3.msra.mxu1 %v1695_v32 }
 0x405   : > { %4589 = vmatprep.subr.mxu1 %v1690_v34 }
 0x406   : > { %4590 = vmatpush3.msra.mxu1 %v1690_v34 }
 0x407   : > { %4599 = vmatprep.subr.mxu1 %v1433_v35 }
 0x48c   : > { %v5161_v61 = vpop.f32.mrf.mxu0 }
 0x48e   : > { %v5163_v62 = vpop.f32.mrf.mxu0 }
 0x494   : > { %v4568_v0 = vpop.f32.mrf.mxu0 }
 0x495   : > { %v1607_v1 = vadd.f32 %v4568_v0, %v4153_v63 }
 0x496   : > { %v1601_v2 = vpop.f32.mrf.mxu0 }
 0x497   : > { %v1602_v3 = vadd.f32 %v4153_v63, %v1601_v2  ;;  %4580 = vmatprep.subr.msk.mxu0 %vm1698_vm10, %v1607_v1  ;;  %v4179_v2 = vld [vmem:[%s5554_s4 + $0x1] ss:$0 sm:$0xff] }
 0x498   : > { %4581 = vmatpush3.xpose.msk.msra.mxu0 %vm1698_vm10, %v1607_v1 }
 0x499   : > { %4582 = vmatprep.subr.msk.mxu0 %vm1698_vm10, %v1602_v3 }
 0x49c   : > { %4583 = vmatpush3.xpose.msk.msra.mxu0 %vm1698_vm10, %v1602_v3 }
 0x49d   : > { %4594 = vmatprep.subr.mxu0 %v1893_v49 }
 0x49f   : > { %4585 = vmatmul.mubr.msk.f32.vlgmr.msra.gmra.mxu0 %vm1698_vm10, %v1519_v58  ;;  %v4187_v58 = vld [vmem:[%s5554_s4 + $0x5] ss:$0 sm:$0xff] }
 0x4a0   : > { %4595 = vmatpush3.msra.mxu0 %v1893_v49 }
 0x4a1   : > { %4610 = vmatprep.subr.mxu0 %v4177_v50 }
 0x55f   : > { %v4586_v10 = vpop.f32.mrf.mxu0 }
 0x560   : > { %v1787_v12 = vmul.f32 0.35355338, %v4586_v10  ;;  %v4191_v10 = vld [vmem:[%s5553_s3 + $0x128] sm:$0xff] }
 0x561   : > { %v1777_v13 = vpop.f32.mrf.mxu0 }
 0x562   : > { %v1786_v15 = vmul.f32 0.35355338, %v1777_v13  ;;  %v1789_v16 = vadd.f32 %v1787_v12, %v5190_v11  ;;  %v4190_v12 = vld [vmem:[%s5553_s3 + $0x120] sm:$0xff] }
 0x564   : > { %v1793_v17 = vsel %vm862_vm1, %v1789_v16, -inf  ;;  %v1788_v18 = vadd.f32 %v1786_v15, %v5195_v14 }
 0x565   : > { %1794 = vmax.xlane.f32.xlu0 %v1793_v17 }
 0x566   : > { %v1790_v19 = vsel %vm862_vm1, %v1788_v18, -inf }
 0x567   : > { %1791 = vmax.xlane.f32.xlu1 %v1790_v19 }
 0x5ee   : > { %v1795_v20 = vpop.xlane.xlu0 %1794 }
 0x5ef   : > { %v1797_v21 = vsub.f32 %v1789_v16, %v1795_v20 }
 0x5f0   : > { %v1792_v22 = vpop.xlane.xlu1 %1791 }
 0x5f1   : > { %v1800_v23 = vmul.f32 1.442695, %v1797_v21  ;;  %v1796_v24 = vsub.f32 %v1788_v18, %v1792_v22 }
 0x5f3   : > { %4841 = vpow2.f32 %v1800_v23  ;;  %v1798_v25 = vmul.f32 1.442695, %v1796_v24 }
 0x5f5   : > { %4843 = vpow2.f32 %v1798_v25 }
 0x600   : > { %v4842_v26 = vpop.eup %4841 }
 0x601   : > { %v1805_v27 = vsel %vm862_vm1, %v4842_v26, 0.0 }
 0x602   : > { %v4844_v28 = vpop.eup %4843  ;;  %1806 = vadd.xlane.f32.xlu1 %v1805_v27 }
 0x603   : > { %v1802_v29 = vsel %vm862_vm1, %v4844_v28, 0.0 }
 0x604   : > { %1803 = vadd.xlane.f32.xlu0 %v1802_v29 }
 0x68b   : > { %v1807_v36 = vpop.xlane.xlu1 %1806 }
 0x68c   : > { %4845 = vrcp.f32 %v1807_v36 }
 0x68d   : > { %v1804_v37 = vpop.xlane.xlu0 %1803 }
 0x68e   : > { %4847 = vrcp.f32 %v1804_v37 }
 0x699   : > { %v4846_v38 = vpop.eup %4845 }
 0x69a   : > { %v1811_v41 = vmul.f32 %v4846_v38, %v4842_v26 }
 0x69b   : > { %v4848_v39 = vpop.eup %4847 }
 0x69c   : > { %v1809_v40 = vmul.f32 %v4848_v39, %v4844_v28 }
 0x69e   : > { %4591 = vmatprep.mubr.msk.f32.mxu1 %vm862_vm1, %v1809_v40 }
 0x69f   : > { %4592 = vmatmul.mubr.msk.f32.vlgmr.msra.gmra.mxu1 %vm862_vm1, %v1811_v41 }
 0x6a0   : > { %4600 = vmatpush3.msra.mxu1 %v1433_v35  ;;  %4607 = vmatprep.mubr.msk.f32.mxu1 %vm511_vm0, %v5163_v62 }
 0x6a1   : > { %4601 = vmatprep.subr.mxu1 %v1432_v42 }
 0x6a2   : > { %4602 = vmatpush3.msra.mxu1 %v1432_v42 }
 0x6a3   : > { %4603 = vmatprep.subr.mxu1 %v1431_v43 }
 0x6a4   : > { %4604 = vmatpush3.msra.mxu1 %v1431_v43  ;;  %v4204_v43 = vld [vmem:[%s5556_s6 + $0x8] sm:$0xff] }
 0x6a5   : > { %4605 = vmatprep.subr.mxu1 %v1430_v44 }
 0x6a6   : > { %4606 = vmatpush3.msra.mxu1 %v1430_v44  ;;  %v4218_v44 = vld [vmem:[%s5553_s3 + $0xd8] sm:$0xff] }
 0x6a7   : > { %4608 = vmatmul.mubr.msk.f32.vlgmr.msra.gmra.mxu1 %vm511_vm0, %v5161_v61  ;;  %4621 = vmatprep.subr.mxu1 %v4185_v45 }
 0x6a8   : > { %4622 = vmatpush3.msra.mxu1 %v4185_v45  ;;  %4629 = vmatprep.mubr.msk.f32.mxu1 %vm511_vm0, %v5007_v8  ;;  %v4210_v45 = vld [vmem:[%s5553_s3 + $0x58] sm:$0xff] }
 0x6a9   : > { %4623 = vmatprep.subr.mxu1 %v4184_v46 }
 0x6aa   : > { %4624 = vmatpush3.msra.mxu1 %v4184_v46  ;;  %v4209_v46 = vld [vmem:[%s5553_s3 + $0x50] sm:$0xff] }
 0x6ab   : > { %4625 = vmatprep.subr.mxu1 %v4183_v47 }
 0x6ac   : > { %4626 = vmatpush3.msra.mxu1 %v4183_v47  ;;  %v4208_v47 = vld [vmem:[%s5553_s3 + $0x48] sm:$0xff] }
 0x6ad   : > { %4627 = vmatprep.subr.mxu1 %v4182_v48 }
 0x6ae   : > { %4628 = vmatpush3.msra.mxu1 %v4182_v48  ;;  %v4207_v48 = vld [vmem:[%s5553_s3 + $0x40] sm:$0xff] }
 0x6af   : > { %4630 = vmatmul.mubr.msk.f32.vlgmr.msra.gmra.mxu1 %vm511_vm0, %v5010_v9 }
 0x75f   : > { %v4593_v51 = vpop.f32.mrf.mxu1 }
 0x761   : > { %v1884_v52 = vpop.f32.mrf.mxu1 }
 0x762   : > { %4596 = vmatprep.mubr.msk.f32.mxu0 %vm1698_vm10, %v1884_v52  ;;  %v4216_v52 = vld [vmem:[%s5553_s3 + $0xc8] sm:$0xff] }
 0x763   : > { %4597 = vmatmul.mubr.msk.f32.vlgmr.msra.gmra.mxu0 %vm1698_vm10, %v4593_v51  ;;  %v4217_v51 = vld [vmem:[%s5553_s3 + $0xd0] sm:$0xff] }
 0x764   : > { %4611 = vmatpush3.msra.mxu0 %v4177_v50  ;;  %4618 = vmatprep.mubr.msk.f32.mxu0 %vm511_vm0, %v5007_v8 }
 0x765   : > { %4612 = vmatprep.subr.mxu0 %v4176_v53 }
 0x766   : > { %4613 = vmatpush3.msra.mxu0 %v4176_v53  ;;  %v5349_v53 = vld [vmem:[%s5004_s27 + $0x8] sm:$0xff] }
 0x767   : > { %4614 = vmatprep.subr.mxu0 %v4175_v54  ;;  %v5259_v56 = vpop.f32.mrf.mxu1 }
 0x768   : > { %4615 = vmatpush3.msra.mxu0 %v4175_v54 }
 0x769   : > { %4616 = vmatprep.subr.mxu0 %v4174_v55  ;;  %v5265_v57 = vpop.f32.mrf.mxu1 }
 0x76a   : > { %4617 = vmatpush3.msra.mxu0 %v4174_v55  ;;  %v4212_v55 = vld [vmem:[%s5554_s4 + $0x2] ss:$0 sm:$0xff] }
 0x76b   : > { %4619 = vmatmul.mubr.msk.f32.vlgmr.msra.gmra.mxu0 %vm511_vm0, %v5010_v9  ;;  %4632 = vmatprep.subr.mxu0 %v4193_v6 }
 0x76c   : > { %4640 = vmatprep.mubr.msk.f32.mxu0 %vm511_vm0, %v5007_v8  ;;  %4633 = vmatpush3.msra.mxu0 %v4193_v6 }
 0x76d   : > { %4634 = vmatprep.subr.mxu0 %v4192_v7 }
 0x76e   : > { %4635 = vmatpush3.msra.mxu0 %v4192_v7 }
 0x76f   : > { %v4631_v59 = vpop.f32.mrf.mxu1  ;;  %4636 = vmatprep.subr.mxu0 %v4191_v10 }
 0x770   : > { %v2229_v60 = vadd.f32 %v4631_v59, %v4187_v58  ;;  %4637 = vmatpush3.msra.mxu0 %v4191_v10 }
 0x771   : > { %v2223_v61 = vpop.f32.mrf.mxu1  ;;  %4638 = vmatprep.subr.mxu0 %v4190_v12 }
 0x772   : > { %4643 = vmatprep.subr.msk.mxu1 %vm1698_vm10, %v2229_v60  ;;  %v2224_v62 = vadd.f32 %v4187_v58, %v2223_v61  ;;  %4639 = vmatpush3.msra.mxu0 %v4190_v12 }
 0x773   : > { %4644 = vmatpush3.xpose.msk.msra.mxu1 %vm1698_vm10, %v2229_v60  ;;  %4641 = vmatmul.mubr.msk.f32.vlgmr.msra.gmra.mxu0 %vm511_vm0, %v5010_v9 }
 0x774   : > { %4645 = vmatprep.subr.msk.mxu1 %vm1698_vm10, %v2224_v62 }
 0x777   : > { %4646 = vmatpush3.xpose.msk.msra.mxu1 %vm1698_vm10, %v2224_v62 }
 0x778   : > { %4662 = vmatprep.subr.mxu1 %v4210_v45 }
 0x823   : > { %v5274_v63 = vpop.f32.mrf.mxu0 }
 0x824   : > { %v2053_v61 = vadd.f32 %v5259_v56, %v5274_v63  ;;  %v4226_v56 = vld [vmem:[%s5553_s3 + $0x158] sm:$0xff]  ;;  %v4224_v63 = vld [vmem:[%s5553_s3 + $0x148] sm:$0xff] }
 0x825   : > { %v5276_v0 = vpop.f32.mrf.mxu0 }
 0x82b   : > { %v4620_v1 = vpop.f32.mrf.mxu0 }
 0x82c   : > { %v2141_v5 = vadd.f32 %v4620_v1, %v4179_v2  ;;  %v2048_v1 = vadd.f32 %v5265_v57, %v5276_v0  ;;  %v4225_v57 = vld [vmem:[%s5553_s3 + $0x150] sm:$0xff]  ;;  %v4223_v0 = vld [vmem:[%s5553_s3 + $0x140] sm:$0xff] }
 0x82d   : > { %v2135_v3 = vpop.f32.mrf.mxu0 }
 0x82e   : > { %v2136_v4 = vadd.f32 %v4179_v2, %v2135_v3 }
 0x830   : > { %4647 = vmatprep.mubr.msk.f32.mxu1 %vm1698_vm10, %v2136_v4 }
 0x831   : > { %4648 = vmatmul.mubr.msk.f32.vlgmr.msra.gmra.mxu1 %vm1698_vm10, %v2141_v5  ;;  %v4220_v5 = vld [vmem:[%s5554_s4 + $0x6] ss:$0 sm:$0xff] }
 0x832   : > { %4670 = vmatprep.mubr.msk.f32.mxu1 %vm511_vm0, %v5007_v8  ;;  %4663 = vmatpush3.msra.mxu1 %v4210_v45  ;;  %v4243_v45 = vld [vmem:[%s5553_s3 + $0x78] sm:$0xff] }
 0x833   : > { %v4642_v32 = vpop.f32.mrf.mxu0  ;;  %4664 = vmatprep.subr.mxu1 %v4209_v46 }
 0x834   : > { %v2317_v34 = vadd.f32 %v4642_v32, %v4195_v33  ;;  %4665 = vmatpush3.msra.mxu1 %v4209_v46  ;;  %v4242_v46 = vld [vmem:[%s5553_s3 + $0x70] sm:$0xff] }
 0x835   : > { %v2311_v35 = vpop.f32.mrf.mxu0  ;;  %4666 = vmatprep.subr.mxu1 %v4208_v47 }
 0x836   : > { %v2312_v36 = vadd.f32 %v4195_v33, %v2311_v35  ;;  %4650 = vmatprep.subr.mxu0 %v2317_v34  ;;  %4667 = vmatpush3.msra.mxu1 %v4208_v47  ;;  %v4228_v33 = vld [vmem:[%s5554_s4 + $0xa] ss:$0 sm:$0xff] }
 0x837   : > { %4651 = vmatpush3.msra.mxu0 %v2317_v34  ;;  %4668 = vmatprep.subr.mxu1 %v4207_v48  ;;  %v4241_v47 = vld [vmem:[%s5553_s3 + $0x68] sm:$0xff] }
 0x838   : > { %4652 = vmatprep.subr.mxu0 %v2312_v36  ;;  %4669 = vmatpush3.msra.mxu1 %v4207_v48  ;;  %v4240_v48 = vld [vmem:[%s5553_s3 + $0x60] sm:$0xff] }
 0x839   : > { %4653 = vmatpush3.msra.mxu0 %v2312_v36  ;;  %4671 = vmatmul.mubr.msk.f32.vlgmr.msra.gmra.mxu1 %vm511_vm0, %v5010_v9  ;;  %v5341_v9 = vld [vmem:[%s5004_s27] sm:$0xff] }
 0x83a   : > { %4657 = vmatprep.subr.mxu0 %v4204_v43  ;;  %4692 = vmatprep.mubr.msk.f32.mxu1 %vm511_vm0, %v5007_v8  ;;  %v4215_v8 = vld [vmem:[%s5553_s3 + $0xc0] sm:$0xff] }
 0x83b   : > { %4684 = vmatprep.subr.mxu1 %v4226_v56 }
 0x83c   : > { %4685 = vmatpush3.msra.mxu1 %v4226_v56  ;;  %v4257_v56 = vld [vmem:[%s5553_s3 + $0x168] sm:$0xff] }
 0x83d   : > { %4686 = vmatprep.subr.mxu1 %v4225_v57 }
 0x83e   : > { %4687 = vmatpush3.msra.mxu1 %v4225_v57  ;;  %v4256_v57 = vld [vmem:[%s5553_s3 + $0x160] sm:$0xff] }
 0x83f   : > { %4688 = vmatprep.subr.mxu1 %v4224_v63 }
 0x840   : > { %4689 = vmatpush3.msra.mxu1 %v4224_v63 }
 0x841   : > { %4690 = vmatprep.subr.mxu1 %v4223_v0 }
 0x842   : > { %4691 = vmatpush3.msra.mxu1 %v4223_v0 }
 0x843   : > { %4693 = vmatmul.mubr.msk.f32.vlgmr.msra.gmra.mxu1 %vm511_vm0, %v5349_v53 }
 0x8f1   : > { %v4649_v13 = vpop.f32.mrf.mxu1 }
 0x8f2   : > { %v2408_v15 = vmul.f32 0.35355338, %v4649_v13 }
 0x8f3   : > { %v2398_v16 = vpop.f32.mrf.mxu1 }
 0x8f4   : > { %v2407_v17 = vmul.f32 0.35355338, %v2398_v16  ;;  %v2410_v18 = vadd.f32 %v2408_v15, %v5190_v11 }
 0x8f6   : > { %v2414_v19 = vsel %vm862_vm1, %v2410_v18, -inf  ;;  %v2409_v20 = vadd.f32 %v2407_v17, %v5195_v14 }
 0x8f7   : > { %2415 = vmax.xlane.f32.xlu1 %v2414_v19 }
 0x8f8   : > { %v2411_v21 = vsel %vm862_vm1, %v2409_v20, -inf }
 0x8f9   : > { %2412 = vmax.xlane.f32.xlu0 %v2411_v21  ;;  %v4672_v54 = vpop.f32.mrf.mxu1 }
 0x8fa   : > { %v2684_v58 = vadd.f32 %v4672_v54, %v4212_v55 }
 0x8fb   : > { %v2678_v59 = vpop.f32.mrf.mxu1 }
 0x8fc   : > { %v2679_v60 = vadd.f32 %v4212_v55, %v2678_v59  ;;  %v4245_v55 = vld [vmem:[%s5554_s4 + $0x3] ss:$0 sm:$0xff] }
 0x903   : > { %v4694_v32 = vpop.f32.mrf.mxu1 }
 0x904   : > { %v2860_v34 = vadd.f32 %v4694_v32, %v4228_v33 }
 0x905   : > { %v2854_v35 = vpop.f32.mrf.mxu1 }
 0x906   : > { %v2855_v36 = vadd.f32 %v4228_v33, %v2854_v35  ;;  %4702 = vmatprep.subr.mxu1 %v2860_v34 }
 0x907   : > { %4703 = vmatpush3.msra.mxu1 %v2860_v34 }
 0x908   : > { %4704 = vmatprep.subr.mxu1 %v2855_v36 }
 0x909   : > { %4705 = vmatpush3.msra.mxu1 %v2855_v36 }
 0x90a   : > { %4714 = vmatprep.subr.mxu1 %v4243_v45 }
 0x980   : > { %v2416_v22 = vpop.xlane.xlu1 %2415 }
 0x981   : > { %v2418_v23 = vsub.f32 %v2410_v18, %v2416_v22 }
 0x982   : > { %v2413_v24 = vpop.xlane.xlu0 %2412 }
 0x983   : > { %v2421_v25 = vmul.f32 1.442695, %v2418_v23  ;;  %v2417_v26 = vsub.f32 %v2409_v20, %v2413_v24 }
 0x985   : > { %4849 = vpow2.f32 %v2421_v25  ;;  %v2419_v27 = vmul.f32 1.442695, %v2417_v26 }
 0x987   : > { %4851 = vpow2.f32 %v2419_v27 }
 0x992   : > { %v4850_v28 = vpop.eup %4849 }
 0x993   : > { %v2426_v29 = vsel %vm862_vm1, %v4850_v28, 0.0 }
 0x994   : > { %v4852_v30 = vpop.eup %4851  ;;  %2427 = vadd.xlane.f32.xlu1 %v2426_v29 }
 0x995   : > { %v2423_v31 = vsel %vm862_vm1, %v4852_v30, 0.0 }
 0x996   : > { %2424 = vadd.xlane.f32.xlu0 %v2423_v31 }
 0xa1d   : > { %v2428_v37 = vpop.xlane.xlu1 %2427 }
 0xa1e   : > { %4853 = vrcp.f32 %v2428_v37 }
 0xa1f   : > { %v2425_v38 = vpop.xlane.xlu0 %2424 }
 0xa20   : > { %4855 = vrcp.f32 %v2425_v38 }
 0xa2b   : > { %v4854_v39 = vpop.eup %4853 }
 0xa2c   : > { %v2432_v42 = vmul.f32 %v4854_v39, %v4850_v28 }
 0xa2d   : > { %v4856_v40 = vpop.eup %4855 }
 0xa2e   : > { %v2430_v41 = vmul.f32 %v4856_v40, %v4852_v30 }
 0xa30   : > { %4654 = vmatprep.mubr.msk.f32.mxu0 %vm862_vm1, %v2430_v41 }
 0xa31   : > { %4655 = vmatmul.mubr.msk.f32.vlgmr.msra.gmra.mxu0 %vm862_vm1, %v2432_v42 }
 0xa32   : > { %4658 = vmatpush3.msra.mxu0 %v4204_v43  ;;  %v4237_v43 = vld [vmem:[%s5556_s6 + $0x10] sm:$0xff] }
 0xa33   : > { %4673 = vmatprep.subr.mxu0 %v4218_v44 }
 0xaf1   : > { %v4656_v49 = vpop.f32.mrf.mxu0 }
 0xaf3   : > { %v2505_v50 = vpop.f32.mrf.mxu0 }
 0xaf4   : > { %4659 = vmatprep.mubr.msk.f32.mxu0 %vm1698_vm10, %v2505_v50 }
 0xaf5   : > { %4660 = vmatmul.mubr.msk.f32.vlgmr.msra.gmra.mxu0 %vm1698_vm10, %v4656_v49 }
 0xaf6   : > { %4674 = vmatpush3.msra.mxu0 %v4218_v44  ;;  %4681 = vmatprep.mubr.msk.f32.mxu0 %vm511_vm0, %v5341_v9  ;;  %v4251_v44 = vld [vmem:[%s5553_s3 + $0xf8] sm:$0xff] }
 0xaf7   : > { %4675 = vmatprep.subr.mxu0 %v4217_v51 }
 0xaf8   : > { %4676 = vmatpush3.msra.mxu0 %v4217_v51  ;;  %v4250_v51 = vld [vmem:[%s5553_s3 + $0xf0] sm:$0xff] }
 0xaf9   : > { %4677 = vmatprep.subr.mxu0 %v4216_v52 }
 0xafa   : > { %4678 = vmatpush3.msra.mxu0 %v4216_v52  ;;  %v4249_v52 = vld [vmem:[%s5553_s3 + $0xe8] sm:$0xff] }
 0xafb   : > { %4679 = vmatprep.subr.mxu0 %v4215_v8 }
 0xafc   : > { %4680 = vmatpush3.msra.mxu0 %v4215_v8  ;;  %v4248_v8 = vld [vmem:[%s5553_s3 + $0xe0] sm:$0xff] }
 0xafd   : > { %4682 = vmatmul.mubr.msk.f32.vlgmr.msra.gmra.mxu0 %vm511_vm0, %v5349_v53 }
 0xafe   : > { %4699 = vmatprep.mubr.msk.f32.mxu0 %vm1698_vm10, %v2679_v60 }
 0xbb5   : > { %v4661_v62 = vpop.f32.mrf.mxu0 }
 0xbb6   : > { %v5361_v2 = vadd.f32 %v4661_v62, %v2053_v61 }
 0xbb7   : > { %v2588_v3 = vpop.f32.mrf.mxu0 }
 0xbb8   : > { %v5363_v4 = vadd.f32 %v2588_v3, %v2048_v1 }
 0xbbd   : > { %v4683_v6 = vpop.f32.mrf.mxu0 }
 0xbbe   : > { %v2772_v7 = vadd.f32 %v4683_v6, %v4220_v5 }
 0xbbf   : > { %v2766_v10 = vpop.f32.mrf.mxu0 }
 0xbc0   : > { %v2767_v12 = vadd.f32 %v4220_v5, %v2766_v10  ;;  %4695 = vmatprep.subr.msk.mxu0 %vm1698_vm10, %v2772_v7  ;;  %v4253_v5 = vld [vmem:[%s5554_s4 + $0x7] ss:$0 sm:$0xff] }
 0xbc1   : > { %4696 = vmatpush3.xpose.msk.msra.mxu0 %vm1698_vm10, %v2772_v7 }
 0xbc2   : > { %4697 = vmatprep.subr.msk.mxu0 %vm1698_vm10, %v2767_v12 }
 0xbc5   : > { %4698 = vmatpush3.xpose.msk.msra.mxu0 %vm1698_vm10, %v2767_v12 }
 0xbc6   : > { %4709 = vmatprep.subr.mxu0 %v4237_v43 }
 0xbc8   : > { %4700 = vmatmul.mubr.msk.f32.vlgmr.msra.gmra.mxu0 %vm1698_vm10, %v2684_v58 }
 0xbc9   : > { %4710 = vmatpush3.msra.mxu0 %v4237_v43  ;;  %v3782_v43 = vld [vmem:[%s5558_s8 + $0x18] sm:$0xff] }
 0xbca   : > { %4725 = vmatprep.subr.mxu0 %v4251_v44 }
 0xc88   : > { %v4701_v13 = vpop.f32.mrf.mxu0 }
 0xc89   : > { %v2951_v15 = vmul.f32 0.35355338, %v4701_v13 }
 0xc8a   : > { %v2941_v16 = vpop.f32.mrf.mxu0 }
 0xc8b   : > { %v2950_v17 = vmul.f32 0.35355338, %v2941_v16  ;;  %v2953_v18 = vadd.f32 %v2951_v15, %v5190_v11 }
 0xc8d   : > { %v2957_v19 = vsel %vm862_vm1, %v2953_v18, -inf  ;;  %v2952_v20 = vadd.f32 %v2950_v17, %v5195_v14 }
 0xc8e   : > { %2958 = vmax.xlane.f32.xlu1 %v2957_v19 }
 0xc8f   : > { %v2954_v21 = vsel %vm862_vm1, %v2952_v20, -inf }
 0xc90   : > { %2955 = vmax.xlane.f32.xlu0 %v2954_v21 }
 0xd17   : > { %v2959_v22 = vpop.xlane.xlu1 %2958 }
 0xd18   : > { %v2961_v23 = vsub.f32 %v2953_v18, %v2959_v22 }
 0xd19   : > { %v2956_v24 = vpop.xlane.xlu0 %2955 }
 0xd1a   : > { %v2964_v25 = vmul.f32 1.442695, %v2961_v23  ;;  %v2960_v26 = vsub.f32 %v2952_v20, %v2956_v24 }
 0xd1c   : > { %4857 = vpow2.f32 %v2964_v25  ;;  %v2962_v27 = vmul.f32 1.442695, %v2960_v26 }
 0xd1e   : > { %4859 = vpow2.f32 %v2962_v27 }
 0xd29   : > { %v4858_v28 = vpop.eup %4857 }
 0xd2a   : > { %v2969_v29 = vsel %vm862_vm1, %v4858_v28, 0.0 }
 0xd2b   : > { %v4860_v30 = vpop.eup %4859  ;;  %2970 = vadd.xlane.f32.xlu1 %v2969_v29  ;;  %v4261_v29 = vld [vmem:[%s5554_s4 + $0xb] ss:$0 sm:$0xff] }
 0xd2c   : > { %v2966_v31 = vsel %vm862_vm1, %v4860_v30, 0.0 }
 0xd2d   : > { %2967 = vadd.xlane.f32.xlu0 %v2966_v31 }
 0xdb4   : > { %v2971_v37 = vpop.xlane.xlu1 %2970 }
 0xdb5   : > { %4861 = vrcp.f32 %v2971_v37 }
 0xdb6   : > { %v2968_v38 = vpop.xlane.xlu0 %2967 }
 0xdb7   : > { %4863 = vrcp.f32 %v2968_v38 }
 0xdc2   : > { %v4862_v39 = vpop.eup %4861 }
 0xdc3   : > { %v2975_v42 = vmul.f32 %v4862_v39, %v4858_v28  ;;  %v4270_v39 = vld [vmem:[%s5556_s6 + $0x18] sm:$0xff] }
 0xdc4   : > { %v4864_v40 = vpop.eup %4863 }
 0xdc5   : > { %v2973_v41 = vmul.f32 %v4864_v40, %v4860_v30 }
 0xdc7   : > { %4706 = vmatprep.mubr.msk.f32.mxu1 %vm862_vm1, %v2973_v41 }
 0xdc8   : > { %4707 = vmatmul.mubr.msk.f32.vlgmr.msra.gmra.mxu1 %vm862_vm1, %v2975_v42  ;;  %v3694_v42 = vld [vmem:[%s5563_s13] sm:$0xff] }
 0xdc9   : > { %4722 = vmatprep.mubr.msk.f32.mxu1 %vm511_vm0, %v5341_v9  ;;  %4715 = vmatpush3.msra.mxu1 %v4243_v45 }
 0xdca   : > { %4716 = vmatprep.subr.mxu1 %v4242_v46 }
 0xdcb   : > { %4717 = vmatpush3.msra.mxu1 %v4242_v46  ;;  %v4273_v46 = vld [vmem:[%s5557_s7] ss:$0 sm:$0xff] }
 0xdcc   : > { %4718 = vmatprep.subr.mxu1 %v4241_v47 }
 0xdcd   : > { %4719 = vmatpush3.msra.mxu1 %v4241_v47 }
 0xdce   : > { %4720 = vmatprep.subr.mxu1 %v4240_v48 }
 0xdcf   : > { %4721 = vmatpush3.msra.mxu1 %v4240_v48 }
 0xdd0   : > { %4723 = vmatmul.mubr.msk.f32.vlgmr.msra.gmra.mxu1 %vm511_vm0, %v5349_v53 }
 0xdd1   : > { %4744 = vmatprep.mubr.msk.f32.mxu1 %vm511_vm0, %v5341_v9 }
 0xe88   : > { %v4708_v49 = vpop.f32.mrf.mxu1 }
 0xe8a   : > { %v3048_v50 = vpop.f32.mrf.mxu1 }
 0xe8b   : > { %4711 = vmatprep.mubr.msk.f32.mxu0 %vm1698_vm10, %v3048_v50 }
 0xe8c   : > { %4712 = vmatmul.mubr.msk.f32.vlgmr.msra.gmra.mxu0 %vm1698_vm10, %v4708_v49 }
 0xe8d   : > { %4726 = vmatpush3.msra.mxu0 %v4251_v44  ;;  %4733 = vmatprep.mubr.msk.f32.mxu0 %vm511_vm0, %v5341_v9  ;;  %v3781_v44 = vld [vmem:[%s5558_s8 + $0x10] sm:$0xff] }
 0xe8e   : > { %4727 = vmatprep.subr.mxu0 %v4250_v51 }
 0xe8f   : > { %4728 = vmatpush3.msra.mxu0 %v4250_v51 }
 0xe90   : > { %4729 = vmatprep.subr.mxu0 %v4249_v52  ;;  %v4724_v54 = vpop.f32.mrf.mxu1 }
 0xe91   : > { %4730 = vmatpush3.msra.mxu0 %v4249_v52  ;;  %v3227_v58 = vadd.f32 %v4724_v54, %v4245_v55  ;;  %v3695_v54 = vld [vmem:[%s5563_s13 + $0x8] sm:$0xff] }
 0xe92   : > { %4731 = vmatprep.subr.mxu0 %v4248_v8  ;;  %v3221_v59 = vpop.f32.mrf.mxu1 }
 0xe93   : > { %4732 = vmatpush3.msra.mxu0 %v4248_v8  ;;  %v3222_v60 = vadd.f32 %v4245_v55, %v3221_v59  ;;  %v3780_v55 = vld [vmem:[%s5558_s8 + $0x8] sm:$0xff] }
 0xe94   : > { %4734 = vmatmul.mubr.msk.f32.vlgmr.msra.gmra.mxu0 %vm511_vm0, %v5349_v53  ;;  %v3871_v59 = vld [vmem:[%s5559_s9 + $0x28] sm:$0xff] }
 0xe95   : > { %4751 = vmatprep.mubr.msk.f32.mxu0 %vm1698_vm10, %v3222_v60  ;;  %v3870_v60 = vld [vmem:[%s5559_s9 + $0x20] sm:$0xff] }
 0xf4c   : > { %v4713_v61 = vpop.f32.mrf.mxu0 }
 0xf4d   : > { %v5442_v62 = vadd.f32 %v4713_v61, %v5361_v2  ;;  %v4259_v2 = vld [vmem:[%s5553_s3 + $0x178] sm:$0xff] }
 0xf4e   : > { %v3131_v1 = vpop.f32.mrf.mxu0  ;;  %4736 = vmatprep.subr.mxu1 %v4259_v2  ;;  %v3869_v61 = vld [vmem:[%s5559_s9 + $0x18] sm:$0xff] }
 0xf4f   : > { %v5445_v3 = vadd.f32 %v3131_v1, %v5363_v4  ;;  %v4258_v4 = vld [vmem:[%s5553_s3 + $0x170] sm:$0xff]  ;;  %4737 = vmatpush3.msra.mxu1 %v4259_v2 }
 0xf50   : > { %4738 = vmatprep.subr.mxu1 %v4258_v4 }
 0xf51   : > { %4739 = vmatpush3.msra.mxu1 %v4258_v4 }
 0xf52   : > { %4740 = vmatprep.subr.mxu1 %v4257_v56 }
 0xf53   : > { %4741 = vmatpush3.msra.mxu1 %v4257_v56 }
 0xf54   : > { %v4735_v6 = vpop.f32.mrf.mxu0  ;;  %4742 = vmatprep.subr.mxu1 %v4256_v57 }
 0xf55   : > { %v3315_v7 = vadd.f32 %v4735_v6, %v4253_v5  ;;  %4743 = vmatpush3.msra.mxu1 %v4256_v57  ;;  %v3866_v6 = vld [vmem:[%s5559_s9] sm:$0xff] }
 0xf56   : > { %v3309_v10 = vpop.f32.mrf.mxu0  ;;  %4745 = vmatmul.mubr.msk.f32.vlgmr.msra.gmra.mxu1 %vm511_vm0, %v5349_v53 }
 0xf57   : > { %v3310_v12 = vadd.f32 %v4253_v5, %v3309_v10  ;;  %4747 = vmatprep.subr.msk.mxu0 %vm1698_vm10, %v3315_v7  ;;  %v3867_v5 = vld [vmem:[%s5559_s9 + $0x8] sm:$0xff] }
 0xf58   : > { %4748 = vmatpush3.xpose.msk.msra.mxu0 %vm1698_vm10, %v3315_v7 }
 0xf59   : > { %4749 = vmatprep.subr.msk.mxu0 %vm1698_vm10, %v3310_v12 }
 0xf5c   : > { %4750 = vmatpush3.xpose.msk.msra.mxu0 %vm1698_vm10, %v3310_v12 }
 0xf5d   : > { %4761 = vmatprep.subr.mxu0 %v4270_v39 }
 0xf5f   : > { %4752 = vmatmul.mubr.msk.f32.vlgmr.msra.gmra.mxu0 %vm1698_vm10, %v3227_v58  ;;  %v3872_v58 = vld [vmem:[%s5559_s9 + $0x30] sm:$0xff] }
 0xf60   : > { %4762 = vmatpush3.msra.mxu0 %v4270_v39 }
 0xf61   : > { %4773 = vmatprep.subr.mxu0 %v3782_v43 }
0x101f   : > { %v4753_v63 = vpop.f32.mrf.mxu0 }
0x1020   : > { %v3494_v0 = vmul.f32 0.35355338, %v4753_v63 }
0x1021   : > { %v3484_v13 = vpop.f32.mrf.mxu0 }
0x1022   : > { %v3493_v15 = vmul.f32 0.35355338, %v3484_v13  ;;  %v3496_v16 = vadd.f32 %v3494_v0, %v5190_v11 }
0x1024   : > { %v3500_v17 = vsel %vm862_vm1, %v3496_v16, -inf  ;;  %v3495_v18 = vadd.f32 %v3493_v15, %v5195_v14  ;;  %v4746_v14 = vpop.f32.mrf.mxu1 }
0x1025   : > { %3501 = vmax.xlane.f32.xlu1 %v3500_v17  ;;  %v3403_v30 = vadd.f32 %v4746_v14, %v4261_v29 }
0x1026   : > { %v3497_v19 = vsel %vm862_vm1, %v3495_v18, -inf  ;;  %v3397_v31 = vpop.f32.mrf.mxu1 }
0x1027   : > { %3498 = vmax.xlane.f32.xlu0 %v3497_v19  ;;  %v3398_v32 = vadd.f32 %v4261_v29, %v3397_v31  ;;  %4754 = vmatprep.subr.mxu1 %v3403_v30 }
0x1028   : > { %4755 = vmatpush3.msra.mxu1 %v3403_v30 }
0x1029   : > { %4756 = vmatprep.subr.mxu1 %v3398_v32 }
0x102a   : > { %4757 = vmatpush3.msra.mxu1 %v3398_v32 }
0x10ae   : > { %v3502_v20 = vpop.xlane.xlu1 %3501 }
0x10af   : > { %v3504_v21 = vsub.f32 %v3496_v16, %v3502_v20 }
0x10b0   : > { %v3499_v22 = vpop.xlane.xlu0 %3498 }
0x10b1   : > { %v3507_v23 = vmul.f32 1.442695, %v3504_v21  ;;  %v3503_v24 = vsub.f32 %v3495_v18, %v3499_v22 }
0x10b3   : > { %4865 = vpow2.f32 %v3507_v23  ;;  %v3505_v25 = vmul.f32 1.442695, %v3503_v24 }
0x10b5   : > { %4867 = vpow2.f32 %v3505_v25 }
0x10c0   : > { %v4866_v26 = vpop.eup %4865 }
0x10c1   : > { %v3512_v27 = vsel %vm862_vm1, %v4866_v26, 0.0 }
0x10c2   : > { %v4868_v11 = vpop.eup %4867  ;;  %3513 = vadd.xlane.f32.xlu1 %v3512_v27 }
0x10c3   : > { %v3509_v28 = vsel %vm862_vm1, %v4868_v11, 0.0 }
0x10c4   : > { %3510 = vadd.xlane.f32.xlu0 %v3509_v28 }
0x114b   : > { %v3514_v33 = vpop.xlane.xlu1 %3513 }
0x114c   : > { %4869 = vrcp.f32 %v3514_v33 }
0x114d   : > { %v3511_v34 = vpop.xlane.xlu0 %3510 }
0x114e   : > { %4871 = vrcp.f32 %v3511_v34 }
0x1159   : > { %v4870_v35 = vpop.eup %4869 }
0x115a   : > { %v3518_v38 = vmul.f32 %v4870_v35, %v4866_v26 }
0x115b   : > { %v4872_v36 = vpop.eup %4871 }
0x115c   : > { %v3516_v37 = vmul.f32 %v4872_v36, %v4868_v11 }
0x115e   : > { %4758 = vmatprep.mubr.msk.f32.mxu1 %vm862_vm1, %v3516_v37 }
0x115f   : > { %4759 = vmatmul.mubr.msk.f32.vlgmr.msra.gmra.mxu1 %vm862_vm1, %v3518_v38 }
0x1160   : > { %4770 = vmatprep.mubr.msk.f32.mxu1 %vm862_vm1, %v3694_v42 }
0x121f   : > { %v4760_v40 = vpop.f32.mrf.mxu1 }
0x1221   : > { %v3591_v41 = vpop.f32.mrf.mxu1 }
0x1222   : > { %4763 = vmatprep.mubr.msk.f32.mxu0 %vm1698_vm10, %v3591_v41 }
0x1223   : > { %4764 = vmatmul.mubr.msk.f32.vlgmr.msra.gmra.mxu0 %vm1698_vm10, %v4760_v40 }
0x1224   : > { %4774 = vmatpush3.msra.mxu0 %v3782_v43 }
0x1225   : > { %4775 = vmatprep.subr.mxu0 %v3781_v44 }
0x1226   : > { %4776 = vmatpush3.msra.mxu0 %v3781_v44 }
0x1227   : > { %4777 = vmatprep.subr.mxu0 %v3780_v55 }
0x1228   : > { %4778 = vmatpush3.msra.mxu0 %v3780_v55 }
0x12e3   : > { %v4765_v45 = vpop.f32.mrf.mxu0 }
0x12e4   : > { %v3684_v47 = vadd.f32 %v4765_v45, %v5442_v62 }
0x12e5   : > { %v3674_v48 = vpop.f32.mrf.mxu0 }
0x12e6   : > { %v3693_v49 = vadd.f32 %v4273_v46, %v3684_v47  ;;  %v3683_v50 = vadd.f32 %v3674_v48, %v5445_v3  ;;  %v3868_v3 = vld [vmem:[%s5559_s9 + $0x10] sm:$0xff] }
0x12e8   : > { %v3692_v51 = vadd.f32 %v4273_v46, %v3683_v50  ;;  %v3697_v52 = vadd.f32 %v5349_v53, %v3693_v49  ;;  %v3779_v53 = vld [vmem:[%s5558_s8] sm:$0xff] }
0x12e9   : > { %4779 = vmatprep.subr.mxu0 %v3779_v53 }
0x12ea   : > { %4766 = vmatprep.subr.mxu1 %v3697_v52  ;;  %v3696_v8 = vadd.f32 %v5341_v9, %v3692_v51  ;;  %4780 = vmatpush3.msra.mxu0 %v3779_v53  ;;  %v3873_v9 = vld [vmem:[%s5559_s9 + $0x38] sm:$0xff] }
0x12eb   : > { %4767 = vmatpush3.msra.mxu1 %v3697_v52 }
0x12ec   : > { %4768 = vmatprep.subr.mxu1 %v3696_v8 }
0x12ed   : > { %4769 = vmatpush3.msra.mxu1 %v3696_v8 }
0x12ee   : > { %4771 = vmatmul.mubr.msk.f32.vlgmr.msra.gmra.mxu1 %vm862_vm1, %v3695_v54  ;;  %4784 = vmatprep.subr.mxu1 %v3873_v9 }
0x12ef   : > { %4785 = vmatpush3.msra.mxu1 %v3873_v9 }
0x12f0   : > { %4786 = vmatprep.subr.mxu1 %v3872_v58 }
0x12f1   : > { %4787 = vmatpush3.msra.mxu1 %v3872_v58 }
0x12f2   : > { %4788 = vmatprep.subr.mxu1 %v3871_v59 }
0x12f3   : > { %4789 = vmatpush3.msra.mxu1 %v3871_v59 }
0x12f4   : > { %4790 = vmatprep.subr.mxu1 %v3870_v60 }
0x12f5   : > { %4791 = vmatpush3.msra.mxu1 %v3870_v60 }
0x12f6   : > { %4792 = vmatprep.subr.mxu1 %v3869_v61 }
0x12f7   : > { %4793 = vmatpush3.msra.mxu1 %v3869_v61 }
0x12f8   : > { %4794 = vmatprep.subr.mxu1 %v3868_v3 }
0x12f9   : > { %4795 = vmatpush3.msra.mxu1 %v3868_v3 }
0x12fa   : > { %4796 = vmatprep.subr.mxu1 %v3867_v5 }
0x12fb   : > { %4797 = vmatpush3.msra.mxu1 %v3867_v5 }
0x12fc   : > { %4798 = vmatprep.subr.mxu1 %v3866_v6 }
0x12fd   : > { %4799 = vmatpush3.msra.mxu1 %v3866_v6 }
0x13ae   : > { %v4772_v62 = vpop.f32.mrf.mxu1 }
0x13b0   : > { %v3770_v1 = vpop.f32.mrf.mxu1 }
0x13b1   : > { %4781 = vmatprep.mubr.msk.f32.mxu0 %vm511_vm0, %v3770_v1 }
0x13b2   : > { %4782 = vmatmul.mubr.msk.f32.vlgmr.msra.gmra.mxu0 %vm511_vm0, %v4772_v62 }
0x13b3   : > { %4807 = vmatprep.mubr.msk.f32.mxu0 %vm862_vm1, %v3694_v42 }
0x1472   : > { %v4783_v7 = vpop.f32.mrf.mxu0 }
0x1473   : > { %v3865_v2 = vmax.f32 %v4783_v7, 0.0 }
0x1474   : > { %v3855_v10 = vpop.f32.mrf.mxu0 }
0x1475   : > { %v3864_v12 = vmax.f32 %v3855_v10, 0.0 }
0x1477   : > { %4800 = vmatprep.mubr.msk.f32.mxu1 %vm3874_vm11, %v3864_v12 }
0x1478   : > { %4801 = vmatmul.mubr.msk.f32.vlgmr.msra.gmra.mxu1 %vm3874_vm11, %v3865_v2 }
0x1538   : > { %v4802_v4 = vpop.f32.mrf.mxu1 }
0x1539   : > { %v3957_v56 = vadd.f32 %v4802_v4, %v4772_v62 }
0x153a   : > { %v3947_v57 = vpop.f32.mrf.mxu1 }
0x153b   : > { %v3956_v63 = vadd.f32 %v3947_v57, %v3770_v1  ;;  %4803 = vmatprep.subr.mxu0 %v3957_v56 }
0x153c   : > { %4804 = vmatpush3.msra.mxu0 %v3957_v56 }
0x153d   : > { %4805 = vmatprep.subr.mxu0 %v3956_v63 }
0x153e   : > { %4806 = vmatpush3.msra.mxu0 %v3956_v63 }
0x153f   : > { %4808 = vmatmul.mubr.msk.f32.vlgmr.msra.gmra.mxu0 %vm862_vm1, %v3695_v54 }
0x15ff   : > { %v4809_v0 = vpop.f32.mrf.mxu0 }
0x1600   : > { %4034 = vst.msk [vmem:[%s496_s20 + $0x8] sm:$0xff] %vm511_vm0, %v4809_v0 }
0x1601   : > { %v4024_v13 = vpop.f32.mrf.mxu0 }
0x1602   : > { %4033 = vst.msk [vmem:[%s496_s20] sm:$0xff] %vm511_vm0, %v4024_v13 }
0x1603 PF: > { %s25_s18 = sadd.s32 1, %s4881_s18  }
0x1604   : > { %p22_p4 = scmp.ge.s32.totalorder %s25_s18, 4  }
0x1606   :  { %24 = sbr.rel (!%p22_p4) target bundleno = 1 (0x1), region = 145 }

</bundles_post_ra>
